<compile_context>
chip_gen: v7x
topology: tpu7x:2x2x1
jax: 0.10.0
libtpu: 0.0.40
codegen_flags: <defaults>
</compile_context>

<pallas_src>
import functools
import math

import jax
import jax.numpy as jnp
from jax.experimental import pallas as pl
from jax.experimental.pallas import tpu as pltpu

# ---- VP-SDE hyperparameters (standard VP-SDE defaults) ----
BETA_0 = 0.1
BETA_1 = 20.0
SDE_T = 1.0
EPS = 1e-5

# ---- synthetic score-model sizes ----
NUM_CLASSES = 10
HIDDEN = 256
EMB_HALF = 16                        # sinusoidal time embedding dim = 2*EMB_HALF
KE = 2 * EMB_HALF + NUM_CLASSES + 1  # sin | cos | one-hot | ones(for b1) = 43
ROW_W = 128                          # lane-padded width of the fused emb row
_LOG_10000 = math.log(10000.0)


def diffusion_loss_kernel(
    x0_ref,      # (TB, D_pad)   bf16
    noise_ref,   # (TB, D_pad)   f32
    t_ref,       # (TB, 1)       f32
    lbl_ref,     # (TB, 1)       int32
    w1_ref,      # (D_pad, HIDDEN)   bf16  (resident)
    wemb_ref,    # (ROW_W, HIDDEN)   bf16  (resident; rows >= KE are zero)
    w2_ref,      # (HIDDEN, D_pad)   bf16  (resident)
    b2_ref,      # (1, D_pad)    f32       (resident)
    out_ref,     # (8, 128)      f32  per-block partial loss (broadcast value)
    *,
    inv_total,   # 1 / (true_batch * true_D)
    batch_true,  # true (unpadded) batch size
):
    tb = x0_ref.shape[0]

    t = t_ref[...]                                   # (TB, 1) f32
    lbl = lbl_ref[...]                               # (TB, 1) int32
    noise = noise_ref[...]                           # (TB, D_pad) f32

    # --- pad-row mask from the global row index (no extra HBM stream) ---
    rid = (jax.lax.broadcasted_iota(jnp.int32, (tb, 1), 0)
           + pl.program_id(0) * tb)
    mask = (rid < batch_true).astype(jnp.float32)    # (TB, 1)

    # --- VP-SDE marginal_prob (f32 elementwise) ---
    lmc = -0.25 * t * t * (BETA_1 - BETA_0) - 0.5 * t * BETA_0
    mean_coef = jnp.exp(lmc)                          # (TB, 1)
    # numerically stable 1 - exp(u) for u -> 0-  (== -expm1(u)), hand-rolled
    # to stay on ops guaranteed to lower on Mosaic.
    u = 2.0 * lmc
    var = jnp.where(u > -1e-4, -(u + 0.5 * u * u), 1.0 - jnp.exp(u))
    std = jnp.sqrt(jnp.maximum(var, 0.0))             # (TB, 1)

    # --- perturb data: x_t = mean + std * noise (f32; padded cols stay 0) ---
    x_t = mean_coef * x0_ref[...].astype(jnp.float32) + std * noise

    # --- fused embedding row built in-kernel: [sin | cos | one-hot | 1 | 0..]
    lane = jax.lax.broadcasted_iota(jnp.int32, (tb, ROW_W), 1)
    k = jnp.where(lane < EMB_HALF, lane, lane - EMB_HALF).astype(jnp.float32)
    freq = jnp.exp(k * (-_LOG_10000 / EMB_HALF))
    ang = (t * 999.0) * freq                          # (TB, ROW_W)
    sincos = jnp.where(lane < EMB_HALF, jnp.sin(ang), jnp.cos(ang))
    hot = ((lane - 2 * EMB_HALF) == lbl) | (lane == KE - 1)
    row = jnp.where(lane < 2 * EMB_HALF, sincos,
                    jnp.where(hot, 1.0, 0.0))         # (TB, ROW_W) f32

    # --- score model: bf16 MXU operands, f32 accumulation ---
    h = jnp.dot(x_t.astype(jnp.bfloat16), w1_ref[...],
                preferred_element_type=jnp.float32)
    h = h + jnp.dot(row.astype(jnp.bfloat16), wemb_ref[...],
                    preferred_element_type=jnp.float32)
    h = jnp.maximum(h, 0.0)                           # ReLU (f32)
    score = jnp.dot(h.astype(jnp.bfloat16), w2_ref[...],
                    preferred_element_type=jnp.float32) + b2_ref[...]

    # --- masked MSE partial sum for this batch block ---
    diff = (noise - score) * mask                     # padded cols already 0
    dsq = diff * diff
    sse = jnp.sum(jnp.sum(dsq, axis=1, keepdims=True), axis=0, keepdims=True)
    out_ref[...] = jnp.zeros_like(out_ref) + sse * inv_total


def _forward_impl(x_0, label, noise, t, params, tb=256):
    """Jitted glue: pad/prep inputs, launch the batch-gridded Pallas kernel.

    x_0   : (B, C, H, W) f32   (NCHW, PyTorch convention)
    label : (B,) int
    noise : (B, C, H, W) f32   (pre-sampled randn_like(x_0))
    t     : (B,) f32           (pre-sampled uniform in [eps, T])
    """
    B = x_0.shape[0]
    D = x_0.shape[1] * x_0.shape[2] * x_0.shape[3]
    D_pad = params["w1"].shape[0]                     # lane-padded feature dim

    # Batch tile: multiple of 8 sublanes, no larger than the padded batch.
    tb = max(8, min(((int(tb) + 7) // 8) * 8, ((B + 7) // 8) * 8))
    B_pad = ((B + tb - 1) // tb) * tb
    num_blocks = B_pad // tb

    x0_flat = jnp.pad(x_0.reshape(B, D).astype(jnp.bfloat16),
                      ((0, B_pad - B), (0, D_pad - D)))
    noise_flat = jnp.pad(noise.reshape(B, D).astype(jnp.float32),
                         ((0, B_pad - B), (0, D_pad - D)))
    t_col = jnp.pad(t.astype(jnp.float32).reshape(B, 1), ((0, B_pad - B), (0, 0)))
    lbl_col = jnp.pad(label.astype(jnp.int32).reshape(B, 1),
                      ((0, B_pad - B), (0, 0)))

    inv_total = 1.0 / float(B * D)

    kernel = functools.partial(diffusion_loss_kernel,
                               inv_total=inv_total, batch_true=B)

    partials = pl.pallas_call(
        kernel,
        out_shape=jax.ShapeDtypeStruct((num_blocks * 8, 128), jnp.float32),
        grid=(num_blocks,),
        in_specs=[
            pl.BlockSpec((tb, D_pad), lambda i: (i, 0)),        # x0 (bf16)
            pl.BlockSpec((tb, D_pad), lambda i: (i, 0)),        # noise (f32)
            pl.BlockSpec((tb, 1), lambda i: (i, 0)),            # t
            pl.BlockSpec((tb, 1), lambda i: (i, 0)),            # label
            pl.BlockSpec((D_pad, HIDDEN), lambda i: (0, 0)),    # w1 (resident)
            pl.BlockSpec((ROW_W, HIDDEN), lambda i: (0, 0)),    # w_emb (resident)
            pl.BlockSpec((HIDDEN, D_pad), lambda i: (0, 0)),    # w2 (resident)
            pl.BlockSpec((1, D_pad), lambda i: (0, 0)),         # b2 (resident)
        ],
        out_specs=pl.BlockSpec((8, 128), lambda i: (i, 0)),     # partial sums
        compiler_params=pltpu.CompilerParams(
            # Each block writes its own output tile -> safe to run in parallel
            # (megacore shards the batch axis on v7x; no-op on v5e/v6e).
            dimension_semantics=("parallel",),
            vmem_limit_bytes=(48 << 20) if tb > 256 else None),
        cost_estimate=pl.CostEstimate(
            flops=4 * B_pad * D_pad * HIDDEN + 2 * B_pad * ROW_W * HIDDEN,
            transcendentals=3 * B_pad * ROW_W,
            bytes_accessed=(B_pad * (2 * D_pad + 4 * D_pad + 8)
                            + 4 * D_pad * HIDDEN + 2 * ROW_W * HIDDEN
                            + 4 * D_pad)),
    )(x0_flat, noise_flat, t_col, lbl_col,
      params["w1"], params["w_emb"], params["w2"], params["b2"])

    # One scalar per batch block (broadcast across its (8,128) tile).
    return partials.reshape(num_blocks, -1)[:, 0].sum()


gaussian_diffusion_forward = jax.jit(_forward_impl, static_argnames=("tb",))


def init_params(key, D):
    """Deterministic synthetic score-model parameters (lane-padded, bf16 MXU)."""
    D_pad = ((D + 127) // 128) * 128
    ks = jax.random.split(key, 5)

    wts = 0.02 * jax.random.normal(ks[1], (EMB_HALF, HIDDEN), jnp.float32)
    wtc = 0.02 * jax.random.normal(ks[2], (EMB_HALF, HIDDEN), jnp.float32)
    wy = 0.02 * jax.random.normal(ks[3], (NUM_CLASSES, HIDDEN), jnp.float32)
    b1 = jnp.zeros((HIDDEN,), jnp.float32)

    # Fuse [wts ; wtc ; wy ; b1] into one lane-padded (128, HIDDEN) weight,
    # matched against the in-kernel [sin | cos | one-hot | 1] row activation.
    w_emb = jnp.zeros((ROW_W, HIDDEN), jnp.float32)
    w_emb = w_emb.at[0:EMB_HALF, :].set(wts)
    w_emb = w_emb.at[EMB_HALF:2 * EMB_HALF, :].set(wtc)
    w_emb = w_emb.at[2 * EMB_HALF:2 * EMB_HALF + NUM_CLASSES, :].set(wy)
    w_emb = w_emb.at[KE - 1, :].set(b1)

    w1 = 0.02 * jax.random.normal(ks[0], (D, HIDDEN), jnp.float32)
    w2 = 0.02 * jax.random.normal(ks[4], (HIDDEN, D), jnp.float32)
    w1 = jnp.pad(w1, ((0, D_pad - D), (0, 0)))        # padded rows are zero
    w2 = jnp.pad(w2, ((0, 0), (0, D_pad - D)))        # padded cols are zero
    b2 = jnp.zeros((1, D_pad), jnp.float32)

    return {
        "w1": w1.astype(jnp.bfloat16),
        "w_emb": w_emb.astype(jnp.bfloat16),
        "w2": w2.astype(jnp.bfloat16),
        "b2": b2,
    }


if __name__ == "__main__":
    key = jax.random.PRNGKey(0)
    k_x, k_lbl, k_t, k_noise, k_params = jax.random.split(key, 5)

    # Shapes consistent with the module: channels=1, image_size=28.
    # B=40 with tb=16 exercises the batch grid (3 blocks, last one half-masked).
    B, C, H, W = 40, 1, 28, 28
    D = C * H * W

    x_0 = jax.random.normal(k_x, (B, C, H, W), jnp.float32)
    label = jax.random.randint(k_lbl, (B,), 0, NUM_CLASSES)
    # t = rand(B) * (T - eps) + eps   (sampled in glue, consumed by kernel)
    t = jax.random.uniform(k_t, (B,), jnp.float32) * (SDE_T - EPS) + EPS
    noise = jax.random.normal(k_noise, (B, C, H, W), jnp.float32)

    params = init_params(k_params, D)

    loss = gaussian_diffusion_forward(x_0, label, noise, t, params, tb=16)
    loss = jax.block_until_ready(loss)
    assert loss.shape == () and bool(jnp.isfinite(loss))
    # TODO(synk): `sample()` (Euler-Maruyama reverse-SDE loop) is not part of
    # forward() and is left unimplemented.
    print("KERNEL_OK")
</pallas_src>

<mosaic_0001>
module attributes {stable_mosaic.version = 11 : i64} {
  func.func @diffusion_loss_kernel(%arg0: i32, %arg1: memref<16x896xbf16, #tpu.memory_space<vmem>>, %arg2: memref<16x896xf32, #tpu.memory_space<vmem>>, %arg3: memref<16x1xf32, #tpu.memory_space<vmem>>, %arg4: memref<16x1xi32, #tpu.memory_space<vmem>>, %arg5: memref<896x256xbf16, #tpu.memory_space<vmem>>, %arg6: memref<128x256xbf16, #tpu.memory_space<vmem>>, %arg7: memref<256x896xbf16, #tpu.memory_space<vmem>>, %arg8: memref<1x896xf32, #tpu.memory_space<vmem>>, %arg9: memref<8x128xf32, #tpu.memory_space<vmem>>) attributes {dimension_semantics = [#tpu.dimension_semantics<parallel>], iteration_bounds = array<i64: 3>, scalar_prefetch = 0 : i64, scratch_operands = 0 : i64, tpu.core_type = #tpu.core_type<tc>, window_params = [{transform_indices = @transform_0, window_bounds = array<i64: 16, 896>}, {transform_indices = @transform_1, window_bounds = array<i64: 16, 896>}, {transform_indices = @transform_2, window_bounds = array<i64: 16, 1>}, {transform_indices = @transform_3, window_bounds = array<i64: 16, 1>}, {pipeline_mode = #tpu.pipeline_mode<synchronous>, transform_indices = @transform_4, window_bounds = array<i64: 896, 256>}, {pipeline_mode = #tpu.pipeline_mode<synchronous>, transform_indices = @transform_5, window_bounds = array<i64: 128, 256>}, {pipeline_mode = #tpu.pipeline_mode<synchronous>, transform_indices = @transform_6, window_bounds = array<i64: 256, 896>}, {pipeline_mode = #tpu.pipeline_mode<synchronous>, transform_indices = @transform_7, window_bounds = array<i64: 1, 896>}, {transform_indices = @transform_8, window_bounds = array<i64: 8, 128>}]} {
    %c0 = arith.constant 0 : index
    %c0_0 = arith.constant 0 : index
    %0 = vector.load %arg3[%c0, %c0_0] : memref<16x1xf32, #tpu.memory_space<vmem>>, vector<16x1xf32>
    %c0_1 = arith.constant 0 : index
    %c0_2 = arith.constant 0 : index
    %1 = vector.load %arg4[%c0_1, %c0_2] : memref<16x1xi32, #tpu.memory_space<vmem>>, vector<16x1xi32>
    %c0_3 = arith.constant 0 : index
    %c0_4 = arith.constant 0 : index
    %2 = vector.load %arg2[%c0_3, %c0_4] : memref<16x896xf32, #tpu.memory_space<vmem>>, vector<16x896xf32>
    %3 = tpu.iota {dimensions = array<i32: 0>} : vector<16x1xi32>
    %c16_i32 = arith.constant 16 : i32
    %4 = arith.muli %arg0, %c16_i32 : i32
    %5 = vector.broadcast %4 : i32 to vector<16x1xi32>
    %6 = arith.addi %3, %5 : vector<16x1xi32>
    %c40_i32 = arith.constant 40 : i32
    %7 = vector.broadcast %c40_i32 : i32 to vector<16x1xi32>
    %8 = arith.cmpi slt, %6, %7 : vector<16x1xi32>
    %9 = arith.extui %8 : vector<16x1xi1> to vector<16x1xi32>
    %10 = arith.sitofp %9 : vector<16x1xi32> to vector<16x1xf32>
    %cst = arith.constant -2.500000e-01 : f32
    %11 = vector.broadcast %cst : f32 to vector<16x1xf32>
    %12 = arith.mulf %11, %0 : vector<16x1xf32>
    %13 = arith.mulf %12, %0 : vector<16x1xf32>
    %cst_5 = arith.constant 1.990000e+01 : f32
    %14 = vector.broadcast %cst_5 : f32 to vector<16x1xf32>
    %15 = arith.mulf %13, %14 : vector<16x1xf32>
    %cst_6 = arith.constant 5.000000e-01 : f32
    %16 = vector.broadcast %cst_6 : f32 to vector<16x1xf32>
    %17 = arith.mulf %16, %0 : vector<16x1xf32>
    %cst_7 = arith.constant 1.000000e-01 : f32
    %18 = vector.broadcast %cst_7 : f32 to vector<16x1xf32>
    %19 = arith.mulf %17, %18 : vector<16x1xf32>
    %20 = arith.subf %15, %19 : vector<16x1xf32>
    %21 = math.exp %20 : vector<16x1xf32>
    %cst_8 = arith.constant 2.000000e+00 : f32
    %22 = vector.broadcast %cst_8 : f32 to vector<16x1xf32>
    %23 = arith.mulf %22, %20 : vector<16x1xf32>
    %cst_9 = arith.constant -9.99999974E-5 : f32
    %24 = vector.broadcast %cst_9 : f32 to vector<16x1xf32>
    %25 = arith.cmpf ogt, %23, %24 : vector<16x1xf32>
    %cst_10 = arith.constant 5.000000e-01 : f32
    %26 = vector.broadcast %cst_10 : f32 to vector<16x1xf32>
    %27 = arith.mulf %26, %23 : vector<16x1xf32>
    %28 = arith.mulf %27, %23 : vector<16x1xf32>
    %29 = arith.addf %23, %28 : vector<16x1xf32>
    %cst_11 = arith.constant 0.000000e+00 : f32
    %30 = vector.broadcast %cst_11 : f32 to vector<16x1xf32>
    %31 = arith.subf %30, %29 : vector<16x1xf32>
    %32 = math.exp %23 : vector<16x1xf32>
    %cst_12 = arith.constant 1.000000e+00 : f32
    %33 = vector.broadcast %cst_12 : f32 to vector<16x1xf32>
    %34 = arith.subf %33, %32 : vector<16x1xf32>
    %35 = arith.select %25, %31, %34 : vector<16x1xi1>, vector<16x1xf32>
    %cst_13 = arith.constant 0.000000e+00 : f32
    %36 = vector.broadcast %cst_13 : f32 to vector<16x1xf32>
    %37 = arith.maximumf %35, %36 : vector<16x1xf32>
    %38 = math.sqrt %37 : vector<16x1xf32>
    %c0_14 = arith.constant 0 : index
    %c0_15 = arith.constant 0 : index
    %39 = vector.load %arg1[%c0_14, %c0_15] : memref<16x896xbf16, #tpu.memory_space<vmem>>, vector<16x896xbf16>
    %40 = arith.extf %39 : vector<16x896xbf16> to vector<16x896xf32>
    %41 = vector.broadcast %21 : vector<16x1xf32> to vector<16x896xf32>
    %42 = arith.mulf %41, %40 : vector<16x896xf32>
    %43 = vector.broadcast %38 : vector<16x1xf32> to vector<16x896xf32>
    %44 = arith.mulf %43, %2 : vector<16x896xf32>
    %45 = arith.addf %42, %44 : vector<16x896xf32>
    %46 = tpu.iota {dimensions = array<i32: 1>} : vector<16x128xi32>
    %c16_i32_16 = arith.constant 16 : i32
    %47 = vector.broadcast %c16_i32_16 : i32 to vector<16x128xi32>
    %48 = arith.cmpi slt, %46, %47 : vector<16x128xi32>
    %c16_i32_17 = arith.constant 16 : i32
    %49 = vector.broadcast %c16_i32_17 : i32 to vector<16x128xi32>
    %50 = arith.subi %46, %49 : vector<16x128xi32>
    %51 = arith.select %48, %46, %50 : vector<16x128xi1>, vector<16x128xi32>
    %52 = arith.sitofp %51 : vector<16x128xi32> to vector<16x128xf32>
    %cst_18 = arith.constant -0.575646281 : f32
    %53 = vector.broadcast %cst_18 : f32 to vector<16x128xf32>
    %54 = arith.mulf %52, %53 : vector<16x128xf32>
    %55 = math.exp %54 : vector<16x128xf32>
    %cst_19 = arith.constant 9.990000e+02 : f32
    %56 = vector.broadcast %cst_19 : f32 to vector<16x1xf32>
    %57 = arith.mulf %0, %56 : vector<16x1xf32>
    %58 = vector.broadcast %57 : vector<16x1xf32> to vector<16x128xf32>
    %59 = arith.mulf %58, %55 : vector<16x128xf32>
    %c16_i32_20 = arith.constant 16 : i32
    %60 = vector.broadcast %c16_i32_20 : i32 to vector<16x128xi32>
    %61 = arith.cmpi slt, %46, %60 : vector<16x128xi32>
    %62 = math.sin %59 : vector<16x128xf32>
    %63 = math.cos %59 : vector<16x128xf32>
    %64 = arith.select %61, %62, %63 : vector<16x128xi1>, vector<16x128xf32>
    %c32_i32 = arith.constant 32 : i32
    %65 = vector.broadcast %c32_i32 : i32 to vector<16x128xi32>
    %66 = arith.subi %46, %65 : vector<16x128xi32>
    %67 = vector.broadcast %1 : vector<16x1xi32> to vector<16x128xi32>
    %68 = arith.cmpi eq, %66, %67 : vector<16x128xi32>
    %c42_i32 = arith.constant 42 : i32
    %69 = vector.broadcast %c42_i32 : i32 to vector<16x128xi32>
    %70 = arith.cmpi eq, %46, %69 : vector<16x128xi32>
    %71 = arith.ori %68, %70 : vector<16x128xi1>
    %c32_i32_21 = arith.constant 32 : i32
    %72 = vector.broadcast %c32_i32_21 : i32 to vector<16x128xi32>
    %73 = arith.cmpi slt, %46, %72 : vector<16x128xi32>
    %cst_22 = arith.constant 1.000000e+00 : f32
    %cst_23 = arith.constant 0.000000e+00 : f32
    %74 = vector.broadcast %cst_22 : f32 to vector<16x128xf32>
    %75 = vector.broadcast %cst_23 : f32 to vector<16x128xf32>
    %76 = arith.select %71, %74, %75 : vector<16x128xi1>, vector<16x128xf32>
    %77 = arith.select %73, %64, %76 : vector<16x128xi1>, vector<16x128xf32>
    %78 = arith.truncf %45 : vector<16x896xf32> to vector<16x896xbf16>
    %c0_24 = arith.constant 0 : index
    %c0_25 = arith.constant 0 : index
    %79 = vector.load %arg5[%c0_24, %c0_25] : memref<896x256xbf16, #tpu.memory_space<vmem>>, vector<896x256xbf16>
    %cst_26 = arith.constant dense<0.000000e+00> : vector<16x256xf32>
    %80 = tpu.matmul %78, %79, %cst_26 {dimension_numbers = #tpu.dot_dimension_numbers<[1], [0], [0], [1], [0, 0, 1, 1], [], []>} : vector<16x896xbf16>, vector<896x256xbf16>, vector<16x256xf32> -> vector<16x256xf32>
    %81 = arith.truncf %77 : vector<16x128xf32> to vector<16x128xbf16>
    %c0_27 = arith.constant 0 : index
    %c0_28 = arith.constant 0 : index
    %82 = vector.load %arg6[%c0_27, %c0_28] : memref<128x256xbf16, #tpu.memory_space<vmem>>, vector<128x256xbf16>
    %cst_29 = arith.constant dense<0.000000e+00> : vector<16x256xf32>
    %83 = tpu.matmul %81, %82, %cst_29 {dimension_numbers = #tpu.dot_dimension_numbers<[1], [0], [0], [1], [0, 0, 1, 1], [], []>} : vector<16x128xbf16>, vector<128x256xbf16>, vector<16x256xf32> -> vector<16x256xf32>
    %84 = arith.addf %80, %83 : vector<16x256xf32>
    %cst_30 = arith.constant 0.000000e+00 : f32
    %85 = vector.broadcast %cst_30 : f32 to vector<16x256xf32>
    %86 = arith.maximumf %84, %85 : vector<16x256xf32>
    %87 = arith.truncf %86 : vector<16x256xf32> to vector<16x256xbf16>
    %c0_31 = arith.constant 0 : index
    %c0_32 = arith.constant 0 : index
    %88 = vector.load %arg7[%c0_31, %c0_32] : memref<256x896xbf16, #tpu.memory_space<vmem>>, vector<256x896xbf16>
    %cst_33 = arith.constant dense<0.000000e+00> : vector<16x896xf32>
    %89 = tpu.matmul %87, %88, %cst_33 {dimension_numbers = #tpu.dot_dimension_numbers<[1], [0], [0], [1], [0, 0, 1, 1], [], []>} : vector<16x256xbf16>, vector<256x896xbf16>, vector<16x896xf32> -> vector<16x896xf32>
    %c0_34 = arith.constant 0 : index
    %c0_35 = arith.constant 0 : index
    %90 = vector.load %arg8[%c0_34, %c0_35] : memref<1x896xf32, #tpu.memory_space<vmem>>, vector<1x896xf32>
    %91 = vector.broadcast %90 : vector<1x896xf32> to vector<16x896xf32>
    %92 = arith.addf %89, %91 : vector<16x896xf32>
    %93 = arith.subf %2, %92 : vector<16x896xf32>
    %94 = vector.broadcast %10 : vector<16x1xf32> to vector<16x896xf32>
    %95 = arith.mulf %93, %94 : vector<16x896xf32>
    %96 = arith.mulf %95, %95 : vector<16x896xf32>
    %cst_36 = arith.constant dense<0.000000e+00> : vector<16xf32>
    %97 = vector.multi_reduction <add>, %96, %cst_36 [1] : vector<16x896xf32> to vector<16xf32>
    %98 = vector.shape_cast %97 : vector<16xf32> to vector<16x1xf32>
    %cst_37 = arith.constant dense<0.000000e+00> : vector<1xf32>
    %99 = vector.multi_reduction <add>, %98, %cst_37 [0] : vector<16x1xf32> to vector<1xf32>
    %100 = vector.shape_cast %99 : vector<1xf32> to vector<1x1xf32>
    %cst_38 = arith.constant 0.000000e+00 : f32
    %101 = vector.broadcast %cst_38 : f32 to vector<8x128xf32>
    %cst_39 = arith.constant 3.18877537E-5 : f32
    %102 = vector.broadcast %cst_39 : f32 to vector<1x1xf32>
    %103 = arith.mulf %100, %102 : vector<1x1xf32>
    %104 = vector.broadcast %103 : vector<1x1xf32> to vector<8x128xf32>
    %105 = arith.addf %101, %104 : vector<8x128xf32>
    %c0_40 = arith.constant 0 : index
    %c0_41 = arith.constant 0 : index
    %106 = vector.load %arg9[%c0_40, %c0_41] : memref<8x128xf32, #tpu.memory_space<vmem>>, vector<8x128xf32>
    tpu.vector_store %arg9[%c0_40, %c0_41], %105 {strides = array<i32>} : memref<8x128xf32, #tpu.memory_space<vmem>>, vector<8x128xf32>,
    return
  }
  func.func @transform_0(%arg0: i32) -> (i32, i32) {
    %c0_i32 = arith.constant 0 : i32
    %c0_i32_0 = arith.constant 0 : i32
    return %arg0, %c0_i32 : i32, i32
  }
  func.func @transform_1(%arg0: i32) -> (i32, i32) {
    %c0_i32 = arith.constant 0 : i32
    %c0_i32_0 = arith.constant 0 : i32
    return %arg0, %c0_i32 : i32, i32
  }
  func.func @transform_2(%arg0: i32) -> (i32, i32) {
    %c0_i32 = arith.constant 0 : i32
    %c0_i32_0 = arith.constant 0 : i32
    return %arg0, %c0_i32 : i32, i32
  }
  func.func @transform_3(%arg0: i32) -> (i32, i32) {
    %c0_i32 = arith.constant 0 : i32
    %c0_i32_0 = arith.constant 0 : i32
    return %arg0, %c0_i32 : i32, i32
  }
  func.func @transform_4(%arg0: i32) -> (i32, i32) {
    %c0_i32 = arith.constant 0 : i32
    %c0_i32_0 = arith.constant 0 : i32
    %c0_i32_1 = arith.constant 0 : i32
    return %c0_i32, %c0_i32_0 : i32, i32
  }
  func.func @transform_5(%arg0: i32) -> (i32, i32) {
    %c0_i32 = arith.constant 0 : i32
    %c0_i32_0 = arith.constant 0 : i32
    %c0_i32_1 = arith.constant 0 : i32
    return %c0_i32, %c0_i32_0 : i32, i32
  }
  func.func @transform_6(%arg0: i32) -> (i32, i32) {
    %c0_i32 = arith.constant 0 : i32
    %c0_i32_0 = arith.constant 0 : i32
    %c0_i32_1 = arith.constant 0 : i32
    return %c0_i32, %c0_i32_0 : i32, i32
  }
  func.func @transform_7(%arg0: i32) -> (i32, i32) {
    %c0_i32 = arith.constant 0 : i32
    %c0_i32_0 = arith.constant 0 : i32
    %c0_i32_1 = arith.constant 0 : i32
    return %c0_i32, %c0_i32_0 : i32, i32
  }
  func.func @transform_8(%arg0: i32) -> (i32, i32) {
    %c0_i32 = arith.constant 0 : i32
    %c0_i32_0 = arith.constant 0 : i32
    return %arg0, %c0_i32 : i32, i32
  }
}

</mosaic_0001>

<bundles_post_ra>
// kernel: _forward_impl.1
= control target key start
LH: loop header
LB: loop body
LE: loop exit
PB: predicated region body
PF: predicated region fallthrough
CT: control target
= control target key end

     0   :  { %s3859_s27 = smov 0   ;;  %s4999_s0 = inlined_call_operand.vmem [shape: bf16[48,896], index: 0, kind: input, shape index: {}]   ;;  %s5000_s1 = inlined_call_operand.vmem [shape: f32[48,896], index: 1, kind: input, shape index: {}]   ;;  %s5001_s2 = inlined_call_operand.vmem [shape: f32[48,1], index: 2, kind: input, shape index: {}]   ;;  %s5002_s3 = inlined_call_operand.vmem [shape: s32[48,1], index: 3, kind: input, shape index: {}]   ;;  %s5003_s4 = inlined_call_operand.vmem [shape: bf16[896,256], index: 4, kind: input, shape index: {}]   ;;  %s5004_s5 = inlined_call_operand.vmem [shape: bf16[128,256], index: 5, kind: input, shape index: {}]   ;;  %s5005_s6 = inlined_call_operand.vmem [shape: bf16[256,896], index: 6, kind: input, shape index: {}]   ;;  %s5006_s7 = inlined_call_operand.vmem [shape: f32[1,896], index: 7, kind: input, shape index: {}]   ;;  %s5007_s8 = inlined_call_operand.vmem [shape: f32[24,128], index: 8, kind: output, shape index: {}]  }
   0x1 LB: > { %s3865_s28 = sadd.s32 4294967295, %s3804_s27   ;;  %p3071_p0 = scmp.ge.s32.totalorder %s3804_s27, 1  ;;  %s3804_s27 = sphi %s3859_s27, %s18_s27  }
   0x2   : > { %p298_p1 = scmp.lt.s32.totalorder %s3804_s27, 4 }
   0x4   : > { %p299_p2 = pnand %p3071_p0, %p298_p1 }
   0x5   : > { %s3072_s29 = sshll.u32 (!%p299_p2), %s3865_s28, 1  ;;  %v3806_v0 = vmov (!%p299_p2), 0   ;;  %v3410_v53 = vld [vmem:[%s5004_s5 + $0x4] ss:$8 sps:$4 sm:$0xff] (!%p299_p2)   ;;  %v3412_v54 = vld [vmem:[%s5004_s5] ss:$8 sps:$4 sm:$0xff] (!%p299_p2)   ;;  %v397_v57 = vlaneseq (!%p299_p2) }
   0x6   : > { %302 = sbr.rel (%p299_p2) target bundleno = 1235 (0x4d3), region = 52  ;;  %3408 = vset.pattern.permute.xlu0 (!%p299_p2), %v3806_v0  ;;  %p349_p3 = scmp.lt.s32.totalorder (!%p299_p2), %s3072_s29, 5  ;;  %3409 = vset.pattern.permute.xlu1 (!%p299_p2), %v3806_v0  ;;  %v3413_v55 = vld [vmem:[%s5004_s5 + $0x14] ss:$8 sps:$4 sm:$0xff] (!%p299_p2)   ;;  %v3415_v56 = vld [vmem:[%s5004_s5 + $0x10] ss:$8 sps:$4 sm:$0xff] (!%p299_p2)  }
   0x7   : > { %1250 = vmatprep.mubr.bf16.mxu0 (!%p299_p2), %v3806_v0  ;;  %1218 = vmatprep.subr.bf16.mxu0 (!%p299_p2), %v3410_v53  ;;  %v3416_v58 = vld [vmem:[%s5004_s5 + $0x24] ss:$8 sps:$4 sm:$0xff] (!%p299_p2)   ;;  %v3418_v59 = vld [vmem:[%s5004_s5 + $0x20] ss:$8 sps:$4 sm:$0xff] (!%p299_p2)   ;;  %v3900_v60 = vshrl.u32 (!%p299_p2), %v397_v57, 7  ;;  %p374_p4 = scmp.lt.s32.totalorder (!%p299_p2), %s3865_s28, 2 }
   0x8   : > { %1219 = vmatpush1.bf16.msra.mxu0 (!%p299_p2), %v3412_v54  ;;  %v3419_v63 = vld [vmem:[%s5004_s5 + $0x34] ss:$8 sps:$4 sm:$0xff] (!%p299_p2)  }
   0x9   : > { %1220 = vmatprep.subr.bf16.mxu0 (!%p299_p2), %v3413_v55  ;;  %v399_v61 = vadd.s32 (!%p299_p2), 8, %v3900_v60 }
   0xc   : > { %1221 = vmatpush1.bf16.msra.mxu0 (!%p299_p2), %v3415_v56 }
   0xd   : > { %s5009_s29 = smov (!%p349_p3, %s3072_s29), 5  ;;  %1222 = vmatprep.subr.bf16.mxu0 %v3416_v58 }
   0xe   : > { %s3077_s30 = sshll.u32 %s5009_s29, 3  ;;  %s3382_s12 = smul.u32 28, %s5009_s29 }
   0xf   : > { %s366_s11 = scalar_lea.vmem %s5001_s2, %s3077_s30  ;;  %s372_s14 = scalar_lea.vmem %s5002_s3, %s3077_s30 }
  0x10   : > { %v379_v1 = vld [vmem:[%s366_s11] sm:$0xff]  ;;  %v380_v2 = vld [vmem:[%s366_s11 + $0x8] sm:$0xff]  ;;  %1223 = vmatpush1.bf16.msra.mxu0 %v3418_v59  ;;  %s3081_s30 = sshll.u32 %s3865_s28, 4  ;;  %s3959_s15 = scalar_lea.vmem %s4999_s0, %s3382_s12  ;;  %v3808_v59 = vmov 683565275  }
  0x11   : > { %v411_v3 = vmul.f32 -0.25, %v380_v2  ;;  %v417_v4 = vmul.f32 0.5, %v380_v2  ;;  %v555_v5 = vmul.f32 999.0, %v379_v1  ;;  %v410_v6 = vmul.f32 -0.25, %v379_v1  ;;  %v381_v7 = vld [vmem:[%s372_s14] sm:$0xff]  ;;  %v382_v9 = vld [vmem:[%s372_s14 + $0x8] sm:$0xff]  ;;  %1224 = vmatprep.subr.bf16.mxu0 %v3419_v63 }
  0x12   : > { %v416_v8 = vmul.f32 0.5, %v379_v1  ;;  %987 = vperm.xlu1 %3409, %v381_v7   ;;  %v556_v13 = vmul.f32 999.0, %v380_v2  ;;  %v401_v62 = vstv %s3081_s30  ;;  %s3383_s16 = smul.u32 56, %s5009_s29  ;;  %s5011_s28 = smov (!%p374_p4, %s3865_s28), 2 }
  0x13   : > { %v413_v10 = vmul.f32 %v411_v3, %v380_v2  ;;  %v419_v11 = vmul.f32 0.1, %v417_v4  ;;  %559 = vperm.xlu0 %3408, %v555_v5   ;;  %v412_v12 = vmul.f32 %v410_v6, %v379_v1  ;;  %v3421_v1 = vld [vmem:[%s5004_s5 + $0x30] ss:$8 sps:$4 sm:$0xff]   ;;  %v402_v2 = vadd.s32 %v401_v62, %v3900_v60  ;;  %v3422_v5 = vld [vmem:[%s5004_s5 + $0x44] ss:$8 sps:$4 sm:$0xff]  }
  0x14   : > { %v418_v14 = vmul.f32 0.1, %v416_v8  ;;  %v403_v3 = vadd.s32 %v401_v62, %v399_v61  ;;  %v3911_v4 = vand.u32 127, %v397_v57  ;;  %1225 = vmatpush1.bf16.msra.mxu0 %v3421_v1  ;;  %v3807_v6 = vmov 0.0   ;;  %s4073_s18 = scalar_lea.vmem %s5000_s1, %s3383_s16 }
  0x15   : > { %v415_v15 = vmul.f32 19.9, %v413_v10  ;;  %v414_v16 = vmul.f32 19.9, %v412_v12  ;;  %vm404_vm6 = vcmp.lt.s32.totalorder %v402_v2, 40  ;;  %1226 = vmatprep.subr.bf16.mxu0 %v3422_v5 }
  0x16   : > { %990 = vperm.xlu1 %3409, %v382_v9   ;;  %vm405_vm7 = vcmp.lt.s32.totalorder %v403_v3, 40  ;;  %v3917_v7 = vsel %vm404_vm6, 1.0, %v3807_v6  ;;  %v3424_v9 = vld [vmem:[%s5004_s5 + $0x40] ss:$8 sps:$4 sm:$0xff]   ;;  %v3425_v10 = vld [vmem:[%s5004_s5 + $0x54] ss:$8 sps:$4 sm:$0xff]  }
  0x17   : > { %v421_v17 = vsub.f32 %v415_v15, %v419_v11  ;;  %v420_v18 = vsub.f32 %v414_v16, %v418_v14  ;;  %564 = vperm.xlu0 %3408, %v556_v13   ;;  %v3920_v8 = vsel %vm405_vm7, 1.0, %v3807_v6  ;;  %v3427_v11 = vld [vmem:[%s5004_s5 + $0x50] ss:$8 sps:$4 sm:$0xff]   ;;  %v3428_v12 = vld [vmem:[%s5004_s5 + $0x64] ss:$8 sps:$4 sm:$0xff]   ;;  %v3084_v15 = vadd.s32 4294967280, %v3911_v4 }
  0x18   : > { %1227 = vmatpush1.bf16.msra.mxu0 %v3424_v9  ;;  %v3430_v13 = vld [vmem:[%s5004_s5 + $0x60] ss:$8 sps:$4 sm:$0xff]   ;;  %v3431_v14 = vld [vmem:[%s5004_s5 + $0x74] ss:$8 sps:$4 sm:$0xff]   ;;  %v3433_v16 = vld [vmem:[%s5004_s5 + $0x70] ss:$8 sps:$4 sm:$0xff]  }
  0x19   : > { %v424_v19 = vmul.f32 1.442695, %v421_v17  ;;  %v427_v20 = vmul.f32 2.0, %v421_v17  ;;  %v422_v21 = vmul.f32 1.442695, %v420_v18  ;;  %v426_v22 = vmul.f32 2.0, %v420_v18  ;;  %1228 = vmatprep.subr.bf16.mxu0 %v3425_v10 }
  0x1a   : > { %v3436_v17 = vld [vmem:[%s5003_s4 + $0x4] ss:$8 sps:$4 sm:$0xff]   ;;  %vm548_vm8 = vcmp.lt.s32.totalorder %v3911_v4, 16  ;;  %v3809_v62 = vmov 2475754826  }
  0x1b   : > { %3762 = vpow2.f32 %v424_v19  ;;  %v431_v23 = vmul.f32 0.5, %v427_v20  ;;  %v440_v24 = vmul.f32 1.442695, %v427_v20  ;;  %v430_v25 = vmul.f32 0.5, %v426_v22 }
  0x1c   : > { %3764 = vpow2.f32 %v422_v21  ;;  %v438_v26 = vmul.f32 1.442695, %v426_v22  ;;  %vm429_vm0 = vcmp.gt.f32.partialorder %v427_v20, -0.0001  ;;  %vm428_vm1 = vcmp.gt.f32.partialorder %v426_v22, -0.0001  ;;  %1229 = vmatpush1.bf16.msra.mxu0 %v3427_v11 }
  0x1d   : > { %3766 = vpow2.f32 %v440_v24  ;;  %v433_v27 = vmul.f32 %v431_v23, %v427_v20  ;;  %v432_v28 = vmul.f32 %v430_v25, %v426_v22  ;;  %1230 = vmatprep.subr.bf16.mxu0 %v3428_v12  ;;  %v550_v18 = vsel %vm548_vm8, %v3911_v4, %v3084_v15 }
  0x1e   : > { %3768 = vpow2.f32 %v438_v26  ;;  %v551_v19 = vcvt.s32.f32 %v550_v18  ;;  %v3810_v2 = vmov 2131351028   ;;  %v3811_v5 = vmov 2102212464  }
  0x1f   : > { %v435_v29 = vadd.f32 %v433_v27, %v427_v20  ;;  %v434_v30 = vadd.f32 %v432_v28, %v426_v22  ;;  %v3812_v10 = vmov 920167782  }
  0x20   : > { %1231 = vmatpush1.bf16.msra.mxu0 %v3430_v13  ;;  %v552_v20 = vmul.f32 -0.5756463, %v551_v19 }
  0x21   : > { %v437_v33 = vsub.f32 0.0, %v435_v29  ;;  %v436_v35 = vsub.f32 0.0, %v434_v30  ;;  %1232 = vmatprep.subr.bf16.mxu0 %v3431_v14 }
  0x22   : > { %v553_v21 = vmul.f32 1.442695, %v552_v20 }
  0x24   : > { %1233 = vmatpush1.bf16.msra.mxu0 %v3433_v16 }
  0x25   : > { %v3763_v31 = vpop.eup %3762  ;;  %1821 = vmatprep.subr.bf16.mxu0 %v3436_v17  ;;  %v3813_v17 = vmov 1326507024  }
  0x26   : > { %v3765_v32 = vpop.eup %3764  ;;  %491 = vperm.xlu1 %3409, %v3763_v31  }
  0x27   : > { %v3767_v34 = vpop.eup %3766  ;;  %486 = vperm.xlu0 %3408, %v3765_v32  }
  0x28   : > { %v3769_v36 = vpop.eup %3768  ;;  %v443_v37 = vsub.f32 1.0, %v3767_v34  ;;  %v3968_v34 = vld [vmem:[%s3959_s15] sm:$0xff] }
  0x29   : > { %v442_v38 = vsub.f32 1.0, %v3769_v36 }
  0x2a   : > { %v445_v39 = vsel %vm429_vm0, %v437_v33, %v443_v37  ;;  %v3974_v37 = vld [vmem:[%s3959_s15 + $0x10] sm:$0xff] }
  0x2b   : > { %v447_v40 = vmax.f32 %v445_v39, 0.0  ;;  %v444_v41 = vsel %vm428_vm1, %v436_v35, %v442_v38  ;;  %v3971_v35 = vld [vmem:[%s3959_s15 + $0x8] sm:$0xff] }
  0x2c   : > { %v446_v42 = vmax.f32 %v444_v41, 0.0  ;;  %v3981_v41 = vld [vmem:[%s3959_s15 + $0x18] ss:$28 sps:$4 sm:$0xff]  }
  0x2d   : > { %3770 = vrsqrt.f32 %v447_v40  ;;  %vm457_vm2 = vcmp.eq.f32.partialorder %v447_v40, inf  ;;  %v460_v44 = vand.u32 2147483648, %v447_v40  ;;  %vm459_vm3 = vcmp.eq.f32.partialorder %v447_v40, 0.0 }
  0x2e   : > { %3772 = vrsqrt.f32 %v446_v42  ;;  %vm450_vm4 = vcmp.eq.f32.partialorder %v446_v42, inf  ;;  %v453_v47 = vand.u32 2147483648, %v446_v42  ;;  %vm452_vm5 = vcmp.eq.f32.partialorder %v446_v42, 0.0 }
  0x2f   : > { %3774 = vpow2.f32 %v553_v21  ;;  %v476_v53 = vunpack.c.l.bf16 %v3981_v41 }
  0x37   : > { %v3771_v43 = vpop.eup %3770 }
  0x38   : > { %v3773_v45 = vpop.eup %3772  ;;  %v456_v46 = vmul.f32 %v3771_v43, %v447_v40  ;;  %v470_v43 = vunpack.c.l.bf16 %v3968_v34 }
  0x39   : > { %v449_v48 = vmul.f32 %v3773_v45, %v446_v42  ;;  %v3775_v22 = vpop.eup %3774  ;;  %v472_v45 = vunpack.c.l.bf16 %v3971_v35 }
  0x3a   : > { %v458_v49 = vsel %vm457_vm2, %v447_v40, %v456_v46 }
  0x3b   : > { %v461_v50 = vsel %vm459_vm3, %v460_v44, %v458_v49  ;;  %v451_v51 = vsel %vm450_vm4, %v446_v42, %v449_v48  ;;  %v3984_v42 = vld [vmem:[%s3959_s15 + $0x1c] sm:$0xff]  ;;  %v3988_v44 = vld [vmem:[%s3959_s15 + $0x24] sm:$0xff]  ;;  %v473_v48 = vunpack.c.h.bf16 %v3971_v35  ;;  %v474_v49 = vunpack.c.l.bf16 %v3974_v37 }
  0x3c   : > { %515 = vperm.xlu1 %3409, %v461_v50   ;;  %v454_v52 = vsel %vm452_vm5, %v453_v47, %v451_v51  ;;  %v477_v56 = vunpack.c.l.bf16 %v3984_v42  ;;  %v479_v57 = vunpack.c.l.bf16 %v3988_v44 }
  0x3d   : > { %510 = vperm.xlu0 %3408, %v454_v52   ;;  %v475_v52 = vunpack.c.h.bf16 %v3974_v37 }
  0x92   : > { %v560_v23 = vpop.permute.xlu0 %559 }
  0x93   : > { %v3952_v24 = vmul.f32 %v3775_v22, %v560_v23 }
  0x95   : > { %v569_v25 = vand.u32 2147483647, %v3952_v24  ;;  %v572_v26 = vand.u32 2139095040, %v3952_v24  ;;  %vm571_vm7 = vcmp.lt.s32.totalorder %v3952_v24, 0 }
  0x96   : > { %v565_v27 = vpop.permute.xlu0 %564 }
  0x97   : > { %v573_v28 = vshrl.u32 %v572_v26, 23  ;;  %v3961_v29 = vmul.f32 %v3775_v22, %v565_v27  ;;  %v576_v30 = vand.u32 8388607, %v569_v25 }
  0x99   : > { %v3085_v31 = vadd.s32 4294967169, %v573_v28  ;;  %v673_v32 = vand.u32 2147483647, %v3961_v29  ;;  %v676_v33 = vand.u32 2139095040, %v3961_v29  ;;  %v577_v38 = vor.u32 8388608, %v576_v30 }
  0x9b   : > { %v579_v36 = vadd.s32 1, %v3085_v31  ;;  %v677_v39 = vshrl.u32 %v676_v33, 23  ;;  %v3978_v40 = vand.u32 8388607, %v673_v32  ;;  %v3995_v54 = vshll.u32 %v577_v38, 8  ;;  %v4006_v33 = vld [vmem:[%s3959_s15 + $0x2c] sm:$0xff] }
  0x9d   : > { %vm580_vm9 = vcmp.gt.s32.totalorder %v579_v36, 0  ;;  %v3089_v47 = vadd.s32 4294967169, %v677_v39  ;;  %v681_v55 = vor.u32 8388608, %v3978_v40 }
  0x9e   : > { %v581_v46 = vsel %vm580_vm9, %v579_v36, 0  ;;  %vm570_vm9 = vcmp.le.f32.partialorder %v569_v25, 0.7853982 }
  0x9f   : > { %v582_v50 = vshrl.u32 %v581_v46, 5  ;;  %v583_v51 = vand.u32 31, %v581_v46  ;;  %v683_v1 = vadd.s32 1, %v3089_v47 }
  0xa1   : > { %v584_v58 = vsub.s32 32, %v583_v51  ;;  %v586_v61 = vshll.u32 %v3808_v59, %v583_v51  ;;  %v589_v63 = vshll.u32 %v3809_v62, %v583_v51  ;;  %v592_v3 = vshll.u32 %v3810_v2, %v583_v51 }
  0xa2   : > { %v595_v9 = vshll.u32 %v3811_v5, %v583_v51  ;;  %v598_v11 = vshll.u32 %v3812_v10, %v583_v51  ;;  %vm601_vm10 = vcmp.lt.s32.totalorder %v582_v50, 1  ;;  %vm602_vm11 = vcmp.lt.s32.totalorder %v582_v50, 2 }
  0xa3   : > { %v587_v12 = vshrl.u32 %v3809_v62, %v584_v58  ;;  %v590_v13 = vshrl.u32 %v3810_v2, %v584_v58  ;;  %v593_v14 = vshrl.u32 %v3811_v5, %v584_v58  ;;  %v585_v15 = vshrl.u32 %v3808_v59, %v584_v58 }
  0xa4   : > { %v596_v16 = vshrl.u32 %v3812_v10, %v584_v58  ;;  %v599_v18 = vshrl.u32 %v3813_v17, %v584_v58  ;;  %vm603_vm12 = vcmp.lt.s32.totalorder %v582_v50, 3  ;;  %vm684_vm13 = vcmp.gt.s32.totalorder %v683_v1, 0 }
  0xa5   : > { %v588_v19 = vor.u32 %v587_v12, %v586_v61  ;;  %v591_v20 = vor.u32 %v590_v13, %v589_v63  ;;  %v594_v21 = vor.u32 %v593_v14, %v592_v3  ;;  %vm604_vm14 = vcmp.lt.s32.totalorder %v582_v50, 4 }
  0xa6   : > { %v597_v22 = vor.u32 %v596_v16, %v595_v9  ;;  %v600_v23 = vor.u32 %v599_v18, %v598_v11  ;;  %v685_v26 = vsel %vm684_vm13, %v683_v1, 0  ;;  %v4016_v1 = vpop.permute.xlu1 %987  ;;  %v480_v3 = vunpack.c.h.bf16 %v3988_v44 }
  0xa7   : > { %v605_v27 = vsel %vm601_vm10, %v585_v15, %v588_v19  ;;  %v606_v28 = vsel %vm604_vm14, %v594_v21, 2102212464  ;;  %v609_v30 = vsel %vm601_vm10, %v588_v19, %v591_v20  ;;  %v613_v31 = vsel %vm601_vm10, %v591_v20, %v594_v21 }
  0xa8   : > { %v607_v36 = vsel %vm603_vm12, %v591_v20, %v606_v28  ;;  %v610_v38 = vsel %vm604_vm14, %v597_v22, 920167782  ;;  %v614_v39 = vsel %vm604_vm14, %v600_v23, 1326507024  ;;  %v4009_v40 = vshrl.u32 %v685_v26, 5 }
  0xa9   : > { %v608_v46 = vsel %vm602_vm11, %v605_v27, %v607_v36  ;;  %v611_v47 = vsel %vm603_vm12, %v594_v21, %v610_v38  ;;  %v615_v51 = vsel %vm603_vm12, %v597_v22, %v614_v39  ;;  %v687_v58 = vand.u32 31, %v685_v26 }
  0xaa   : > { %v612_v61 = vsel %vm602_vm11, %v609_v30, %v611_v47  ;;  %v616_v63 = vsel %vm602_vm11, %v613_v31, %v615_v51  ;;  %v481_v9 = vunpack.c.l.bf16 %v4006_v33  ;;  %v624_v15 = vmul.u32 %v3995_v54, %v608_v46  ;;  %v4038_v39 = vpop.permute.xlu1 %990 }
  0xab   : > { %v4021_v11 = vmul.u32.u64.low %v3995_v54, %v616_v63  ;;  %v4022_v12 = vmul.u32.u64.high %v3995_v54, %v616_v63, %v4021_v11  ;;  %v4025_v13 = vmul.u32.u64.low %v3995_v54, %v612_v61  ;;  %v4026_v14 = vmul.u32.u64.high %v3995_v54, %v612_v61, %v4025_v13  ;;  %v4044_v61 = vpop.permute.xlu0 %486 }
  0xac   : > { %v688_v16 = vsub.s32 32, %v687_v58  ;;  %v4030_v50 = vshll.u32 %v681_v55, 8  ;;  %v482_v18 = vunpack.c.h.bf16 %v4006_v33  ;;  %v690_v19 = vshll.u32 %v3808_v59, %v687_v58 }
  0xad   : > { %v693_v20 = vshll.u32 %v3809_v62, %v687_v58  ;;  %v696_v21 = vshll.u32 %v3810_v2, %v687_v58  ;;  %vm705_vm15 = vcmp.lt.s32.totalorder %v4009_v40, 1  ;;  %v699_v27 = vshll.u32 %v3811_v5, %v687_v58 }
  0xae   : > { %v691_v22 = vshrl.u32 %v3809_v62, %v688_v16  ;;  %v694_v23 = vshrl.u32 %v3810_v2, %v688_v16  ;;  %v697_v26 = vshrl.u32 %v3811_v5, %v688_v16  ;;  %vm626_vm0 = vc.u32 %v4022_v12, %v4025_v13 }
  0xaf   : > { %v627_v54 = vadd.s32 1, %v4026_v14  ;;  %v700_v28 = vshrl.u32 %v3812_v10, %v688_v16  ;;  %v702_v55 = vshll.u32 %v3812_v10, %v687_v58  ;;  %v703_v38 = vshrl.u32 %v3813_v17, %v688_v16 }
  0xb0   : > { %v692_v30 = vor.u32 %v691_v22, %v690_v19  ;;  %v695_v31 = vor.u32 %v694_v23, %v693_v20  ;;  %v698_v36 = vor.u32 %v697_v26, %v696_v21  ;;  %vm706_vm1 = vcmp.lt.s32.totalorder %v4009_v40, 2 }
  0xb1   : > { %v628_v46 = vsel %vm626_vm0, %v627_v54, %v4026_v14  ;;  %v701_v62 = vor.u32 %v700_v28, %v699_v27  ;;  %vm708_vm2 = vcmp.lt.s32.totalorder %v4009_v40, 4  ;;  %v689_v5 = vshrl.u32 %v3808_v59, %v688_v16  ;;  %v4068_v27 = vpop.permute.xlu1 %491 }
  0xb2   : > { %v629_v2 = vadd.s32 %v628_v46, %v624_v15  ;;  %v704_v47 = vor.u32 %v703_v38, %v702_v55  ;;  %v710_v51 = vsel %vm708_vm2, %v698_v36, 2102212464  ;;  %vm707_vm3 = vcmp.lt.s32.totalorder %v4009_v40, 3 }
  0xb3   : > { %v713_v10 = vsel %vm705_vm15, %v692_v30, %v695_v31  ;;  %v714_v17 = vsel %vm708_vm2, %v701_v62, 920167782  ;;  %v717_v58 = vsel %vm705_vm15, %v695_v31, %v698_v36  ;;  %v709_v11 = vsel %vm705_vm15, %v689_v5, %v692_v30 }
  0xb4   : > { %v630_v63 = vadd.s32 536870912, %v629_v2  ;;  %v715_v14 = vsel %vm707_vm3, %v698_v36, %v714_v17  ;;  %v718_v59 = vsel %vm708_vm2, %v704_v47, 1326507024  ;;  %v711_v15 = vsel %vm707_vm3, %v695_v31, %v710_v51  ;;  %v386_v47 = vld [vmem:[%s4073_s18 + $0x18] sm:$0xff]  ;;  %v393_v51 = vld [vmem:[%s4073_s18 + $0x50] sm:$0xff] }
  0xb5   : > { %v716_v16 = vsel %vm706_vm1, %v713_v10, %v715_v14  ;;  %v719_v19 = vsel %vm707_vm3, %v701_v62, %v718_v59  ;;  %v494_v20 = vmul.f32 %v4044_v61, %v470_v43  ;;  %v501_v28 = vmul.f32 %v4068_v27, %v477_v56  ;;  %v385_v10 = vld [vmem:[%s4073_s18 + $0x10] sm:$0xff] }
  0xb6   : > { %v4059_v21 = vshrl.u32 %v630_v63, 30  ;;  %v720_v22 = vsel %vm706_vm1, %v717_v58, %v719_v19  ;;  %v4064_v23 = vmul.u32.u64.low %v4030_v50, %v716_v16  ;;  %v4065_v26 = vmul.u32.u64.high %v4030_v50, %v716_v16, %v4064_v23 }
  0xb7   : > { %v4076_v43 = vmul.u32.u64.low %v4030_v50, %v720_v22  ;;  %v4077_v54 = vmul.u32.u64.high %v4030_v50, %v720_v22, %v4076_v43  ;;  %v497_v55 = vmul.f32 %v4044_v61, %v473_v48  ;;  %v712_v31 = vsel %vm706_vm1, %v709_v11, %v711_v15  ;;  %v392_v11 = vld [vmem:[%s4073_s18 + $0x48] sm:$0xff] }
  0xb8   : > { %v632_v30 = vshll.u32 %v4059_v21, 30  ;;  %v504_v36 = vmul.f32 %v4068_v27, %v480_v3  ;;  %v496_v38 = vmul.f32 %v4044_v61, %v472_v45  ;;  %v503_v46 = vmul.f32 %v4068_v27, %v479_v57  ;;  %v383_v45 = vld [vmem:[%s4073_s18] sm:$0xff] }
  0xb9   : > { %v4098_v56 = vmul.f32 %v4044_v61, %v475_v52  ;;  %v4101_v48 = vmul.f32 %v4068_v27, %v482_v18  ;;  %v4106_v40 = vmul.f32 %v4044_v61, %v474_v49  ;;  %v731_v44 = vadd.s32 1, %v4065_v26 }
  0xba   : > { %v633_v35 = vsub.s32 %v629_v2, %v632_v30  ;;  %v4113_v52 = vmul.f32 %v4068_v27, %v481_v9  ;;  %v728_v57 = vmul.u32 %v4030_v50, %v712_v31  ;;  %vm730_vm4 = vc.u32 %v4077_v54, %v4064_v23  ;;  %v390_v50 = vld [vmem:[%s4073_s18 + $0x38] sm:$0xff] }
  0xbb   : > { %v4121_v37 = vmul.f32 %v4044_v61, %v476_v53  ;;  %v732_v3 = vsel %vm730_vm4, %v731_v44, %v4065_v26  ;;  %v4127_v2 = vpop.permute.xlu1 %515  ;;  %vm675_vm10 = vcmp.lt.s32.totalorder %v3961_v29, 0  ;;  %vm674_vm11 = vcmp.le.f32.partialorder %v673_v32, 0.7853982 }
  0xbc   : > { %v635_v49 = vsub.s32 0, %v633_v35  ;;  %v4124_v18 = vpop.permute.xlu0 %510  ;;  %v733_v33 = vadd.s32 %v732_v3, %v728_v57  ;;  %v525_v58 = vmul.f32 %v4127_v2, %v390_v50  ;;  %v528_v15 = vmul.f32 %v4127_v2, %v393_v51 }
  0xbd   : > { %v518_v9 = vmul.f32 %v4124_v18, %v383_v45  ;;  %v521_v59 = vmul.f32 %v4124_v18, %v386_v47  ;;  %v520_v16 = vmul.f32 %v4124_v18, %v385_v10  ;;  %v388_v45 = vld [vmem:[%s4073_s18 + $0x28] sm:$0xff]  ;;  %v625_v57 = vadd.s32 %v4025_v13, %v4022_v12  ;;  %v395_v13 = vld [vmem:[%s4073_s18 + $0x60] sm:$0xff] }
  0xbe   : > { %v3086_v62 = vmin.u32 %v635_v49, %v633_v35  ;;  %v734_v5 = vadd.s32 536870912, %v733_v33  ;;  %v4143_v22 = vadd.f32 %v525_v58, %v501_v28  ;;  %v4147_v43 = vadd.f32 %v528_v15, %v504_v36  ;;  %v387_v10 = vld [vmem:[%s4073_s18 + $0x20] sm:$0xff] }
  0xbf   : > { %v4136_v63 = vadd.f32 %v518_v9, %v494_v20  ;;  %v4145_v26 = vadd.f32 %v521_v59, %v497_v55  ;;  %v527_v20 = vmul.f32 %v4127_v2, %v392_v11  ;;  %v4155_v55 = vadd.f32 %v520_v16, %v496_v38  ;;  %v389_v11 = vld [vmem:[%s4073_s18 + $0x30] sm:$0xff] }
  0xc0   : > { %v637_v17 = vclz %v3086_v62  ;;  %v4133_v53 = vshrl.u32 %v734_v5, 30  ;;  %v523_v5 = vmul.f32 %v4124_v18, %v388_v45  ;;  %v483_v47 = vunpack.c.h.bf16 %v3981_v41 }
  0xc1   : > { %v1002_v44 = vpack.c.bf16 %v4143_v22, %v4136_v63  ;;  %v4159_v50 = vadd.f32 %v527_v20, %v503_v46  ;;  %v530_v46 = vmul.f32 %v4127_v2, %v395_v13  ;;  %v522_v41 = vmul.f32 %v4124_v18, %v387_v10  ;;  %v3488_v63 = vld [vmem:[%s5003_s4 + $0x120] ss:$8 sps:$4 sm:$0xff]   ;;  %v3493_v22 = vld [vmem:[%s5003_s4 + $0x134] ss:$8 sps:$4 sm:$0xff]  }
  0xc2   : > { %v3087_v14 = vadd.s32 4294967294, %v637_v17  ;;  %v736_v19 = vshll.u32 %v4133_v53, 30  ;;  %v394_v17 = vld [vmem:[%s4073_s18 + $0x58] sm:$0xff]  ;;  %v4172_v16 = vadd.f32 %v523_v5, %v4098_v56  ;;  %v759_v25 = vsub.s32 4, %v4133_v53 }
  0xc3   : > { %v529_v20 = vmul.f32 %v4127_v2, %v394_v17  ;;  %v655_v17 = vsub.s32 4, %v4059_v21  ;;  %vm994_vm12 = vcmp.eq.s32.totalorder %v3911_v4, 42 }
  0xc4   : > { %vm3088_vm5 = vcmp.lt.s32.totalorder %v3087_v14, 0  ;;  %v737_v31 = vsub.s32 %v733_v33, %v736_v19  ;;  %v1005_v33 = vpack.c.bf16 %v4147_v43, %v4145_v26  ;;  %v3491_v26 = vld [vmem:[%s5003_s4 + $0x130] ss:$8 sps:$4 sm:$0xff]   ;;  %v3496_v43 = vld [vmem:[%s5003_s4 + $0x144] ss:$8 sps:$4 sm:$0xff]  }
  0xc5   : > { %v640_v30 = vsel %vm3088_vm5, 0, %v3087_v14  ;;  %v396_v14 = vld [vmem:[%s4073_s18 + $0x68] sm:$0xff]  ;;  %v4186_v56 = vadd.f32 %v529_v20, %v4113_v52  ;;  %vm997_vm5 = vcmp.lt.s32.totalorder %v3911_v4, 32 }
  0xc6   : > { %v641_v49 = vsub.s32 32, %v640_v30  ;;  %v645_v28 = vsub.s32 4294967266, %v640_v30  ;;  %v642_v36 = vshll.u32 %v633_v35, %v640_v30  ;;  %v739_v3 = vsub.s32 0, %v737_v31 }
  0xc7   : > { %v1004_v35 = vpack.c.bf16 %v4159_v50, %v4155_v55  ;;  %v507_v30 = vmul.f32 %v4068_v27, %v483_v47  ;;  %v3538_v55 = vld [vmem:[%s5003_s4 + $0x224] ss:$8 sps:$4 sm:$0xff]   ;;  %v3631_v50 = vld [vmem:[%s5005_s6 + $0x1f8] ss:$28 sps:$4 sm:$0xff]  }
  0xc8   : > { %v643_v9 = vshrl.u32 %v625_v57, %v641_v49  ;;  %v646_v62 = vadd.s32 127, %v645_v28  ;;  %v3090_v12 = vmin.u32 %v739_v3, %v737_v31  ;;  %v4178_v57 = vadd.f32 %v530_v46, %v4101_v48 }
  0xc9   : > { %v524_v49 = vmul.f32 %v4124_v18, %v389_v11  ;;  %v531_v28 = vmul.f32 %v4127_v2, %v396_v14  ;;  %v729_v48 = vadd.s32 %v4064_v23, %v4077_v54 }
  0xca   : > { %v644_v51 = vor.u32 %v643_v9, %v642_v36  ;;  %v647_v38 = vshll.u32 %v646_v62, 23  ;;  %v741_v58 = vclz %v3090_v12  ;;  %v4183_v36 = vadd.f32 %v522_v41, %v4106_v40 }
  0xcb   : > { %v1007_v62 = vpack.c.bf16 %v4178_v57, %v4172_v16  ;;  %v4191_v5 = vadd.f32 %v524_v49, %v4121_v37  ;;  %v3536_v16 = vld [vmem:[%s5003_s4 + $0x220] ss:$8 sps:$4 sm:$0xff]   ;;  %v3541_v57 = vld [vmem:[%s5003_s4 + $0x234] ss:$8 sps:$4 sm:$0xff]  }
  0xcc   : > { %v648_v59 = vor.u32 4788187, %v647_v38  ;;  %v651_v15 = vcvt.s32.f32 %v644_v51  ;;  %v3091_v19 = vadd.s32 4294967294, %v741_v58  ;;  %v1006_v40 = vpack.c.bf16 %v4186_v56, %v4183_v36  ;;  %v3589_v36 = vld [vmem:[%s5003_s4 + $0x334] ss:$8 sps:$4 sm:$0xff]  }
  0xcd   : > { %v4197_v51 = vadd.f32 %v531_v28, %v507_v30  ;;  %v3592_v56 = vld [vmem:[%s5003_s4 + $0x344] ss:$8 sps:$4 sm:$0xff]  }
  0xce   : > { %v649_v45 = vand.u32 2147483647, %v648_v59  ;;  %vm3092_vm6 = vcmp.lt.s32.totalorder %v3091_v19, 0 }
  0xcf   : > { %v744_v9 = vsel %vm3092_vm6, 0, %v3091_v19  ;;  %v1008_v23 = vpack.c.bf16 %v4197_v51, %v4191_v5  ;;  %vm661_vm6 = vweird.f32 %v3952_v24  ;;  %v3652_v5 = vld [vmem:[%s5005_s6 + $0xc] ss:$28 sps:$4 sm:$0xff]  }
  0xd0   : > { %v652_v3 = vmul.f32 %v651_v15, %v649_v45  ;;  %v745_v12 = vsub.s32 32, %v744_v9  ;;  %v749_v13 = vsub.s32 4294967266, %v744_v9  ;;  %v746_v52 = vshll.u32 %v737_v31, %v744_v9 }
  0xd1   : > { %v656_v31 = vsel %vm571_vm7, %v655_v17, %v4059_v21  ;;  %v760_v45 = vsel %vm675_vm10, %v759_v25, %v4133_v53  ;;  %v3101_v21 = vadd.s32 4294967264, %v3911_v4  ;;  %v471_v53 = vunpack.c.h.bf16 %v3968_v34  ;;  %v391_v34 = vld [vmem:[%s4073_s18 + $0x40] sm:$0xff] }
  0xd2   : > { %v653_v47 = vxor.u32 2147483648, %v652_v3  ;;  %v747_v38 = vshrl.u32 %v729_v48, %v745_v12  ;;  %v750_v10 = vadd.s32 127, %v749_v13  ;;  %v658_v46 = vsel %vm570_vm9, 0, %v656_v31  ;;  %v3442_v4 = vld [vmem:[%s5003_s4 + $0x24] ss:$8 sps:$4 sm:$0xff]  }
  0xd3   : > { %v662_v20 = vadd.s32 3, %v658_v46  ;;  %v762_v9 = vsel %vm674_vm11, 0, %v760_v45  ;;  %v870_v12 = vand.u32 3, %v658_v46  ;;  %vm992_vm13 = vcmp.eq.s32.totalorder %v3101_v21, %v4016_v1 }
  0xd4   : > { %v654_v37 = vsel %vm571_vm7, %v653_v47, %v652_v3  ;;  %v748_v58 = vor.u32 %v747_v38, %v746_v52  ;;  %v751_v11 = vshll.u32 %v750_v10, 23  ;;  %v766_v32 = vadd.s32 3, %v762_v9  ;;  %vm995_vm2 = vmor %vm992_vm13, %vm994_vm12 }
  0xd5   : > { %v657_v54 = vsel %vm570_vm9, %v3952_v24, %v654_v37  ;;  %v663_v48 = vand.u32 3, %v662_v20  ;;  %v478_v52 = vunpack.c.h.bf16 %v3984_v42  ;;  %vm872_vm0 = vcmp.eq.s32.totalorder %v870_v12, 0 }
  0xd6   : > { %3776 = vcosq.f32 %v657_v54  ;;  %v752_v14 = vor.u32 4788187, %v751_v11  ;;  %v755_v15 = vcvt.s32.f32 %v748_v58  ;;  %vm875_vm1 = vcmp.eq.s32.totalorder %v870_v12, 2  ;;  %v384_v58 = vld [vmem:[%s4073_s18 + $0x8] sm:$0xff] }
  0xd7   : > { %3778 = vsinq.f32 %v657_v54  ;;  %vm665_vm14 = vcmp.eq.s32.totalorder %v663_v48, 0  ;;  %vm668_vm15 = vcmp.eq.s32.totalorder %v663_v48, 2  ;;  %v973_v54 = vand.u32 3, %v762_v9 }
  0xd8   : > { %v753_v59 = vand.u32 2147483647, %v752_v14  ;;  %vm664_vm3 = vcmp.lt.s32.totalorder %v663_v48, 2  ;;  %vm871_vm4 = vcmp.lt.s32.totalorder %v870_v12, 2  ;;  %v767_v1 = vand.u32 3, %v766_v32 }
  0xd9   : > { %v998_v14 = vsel %vm995_vm2, 1.0, %v3807_v6  ;;  %vm993_vm7 = vcmp.eq.s32.totalorder %v3101_v21, %v4038_v39  ;;  %vm978_vm9 = vcmp.eq.s32.totalorder %v973_v54, 2  ;;  %v519_v25 = vmul.f32 %v4124_v18, %v384_v58  ;;  %v3449_v58 = vld [vmem:[%s5003_s4 + $0x50] ss:$8 sps:$4 sm:$0xff]  }
  0xda   : > { %v756_v19 = vmul.f32 %v755_v15, %v753_v59  ;;  %v495_v59 = vmul.f32 %v4044_v61, %v471_v53  ;;  %v502_v15 = vmul.f32 %v4068_v27, %v478_v52  ;;  %vm975_vm13 = vcmp.eq.s32.totalorder %v973_v54, 0  ;;  %v3439_v53 = vld [vmem:[%s5003_s4 + $0x14] ss:$8 sps:$4 sm:$0xff]  }
  0xdc   : > { %v757_v41 = vxor.u32 2147483648, %v756_v19  ;;  %v533_v48 = vadd.f32 %v519_v25, %v495_v59  ;;  %v3458_v59 = vld [vmem:[%s5003_s4 + $0x80] ss:$8 sps:$4 sm:$0xff]  }
  0xdd   : > { %v3464_v25 = vld [vmem:[%s5003_s4 + $0xa0] ss:$8 sps:$4 sm:$0xff]  }
  0xde   : > { %v758_v30 = vsel %vm675_vm10, %v757_v41, %v756_v19  ;;  %v526_v41 = vmul.f32 %v4127_v2, %v391_v34  ;;  %vm772_vm10 = vcmp.eq.s32.totalorder %v767_v1, 2  ;;  %v3454_v34 = vld [vmem:[%s5003_s4 + $0x64] ss:$8 sps:$4 sm:$0xff]  }
  0xdf   : > { %v761_v28 = vsel %vm674_vm11, %v3961_v29, %v758_v30  ;;  %vm769_vm11 = vcmp.eq.s32.totalorder %v767_v1, 0 }
  0xe0   : > { %v3777_v49 = vpop.eup %3776  ;;  %3780 = vcosq.f32 %v761_v28  ;;  %v540_v12 = vadd.f32 %v526_v41, %v502_v15  ;;  %v3463_v15 = vld [vmem:[%s5003_s4 + $0x94] ss:$8 sps:$4 sm:$0xff]  }
  0xe1   : > { %v3779_v3 = vpop.eup %3778  ;;  %3782 = vsinq.f32 %v761_v28  ;;  %v669_v47 = vxor.u32 2147483648, %v3777_v49  ;;  %v3469_v41 = vld [vmem:[%s5003_s4 + $0xb4] ss:$8 sps:$4 sm:$0xff]  }
  0xe2   : > { %v666_v13 = vxor.u32 2147483648, %v3779_v3  ;;  %v1003_v52 = vpack.c.bf16 %v540_v12, %v533_v48  ;;  %v3485_v48 = vld [vmem:[%s5003_s4 + $0x110] ss:$8 sps:$4 sm:$0xff]   ;;  %v3490_v12 = vld [vmem:[%s5003_s4 + $0x124] ss:$8 sps:$4 sm:$0xff]  }
  0xe3   : > { %v670_v10 = vsel %vm668_vm15, %v669_v47, %v3779_v3  ;;  %v877_v17 = vsel %vm875_vm1, %v669_v47, %v3779_v3  ;;  %vm974_vm15 = vcmp.lt.s32.totalorder %v973_v54, 2  ;;  %vm765_vm1 = vweird.f32 %v3961_v29  ;;  %v3434_v29 = vld [vmem:[%s5003_s4] ss:$8 sps:$4 sm:$0xff]  }
  0xe4   : > { %v667_v38 = vsel %vm665_vm14, %v3777_v49, %v666_v13  ;;  %v874_v37 = vsel %vm872_vm0, %v3777_v49, %v666_v13  ;;  %vm768_vm14 = vcmp.lt.s32.totalorder %v767_v1, 2  ;;  %vm996_vm0 = vmor %vm993_vm7, %vm994_vm12  ;;  %v3446_v54 = vld [vmem:[%s5003_s4 + $0x40] ss:$8 sps:$4 sm:$0xff]   ;;  %v3451_v1 = vld [vmem:[%s5003_s4 + $0x54] ss:$8 sps:$4 sm:$0xff]  }
  0xe5   : > { %v671_v42 = vsel %vm664_vm3, %v667_v38, %v670_v10  ;;  %v878_v11 = vsel %vm871_vm4, %v874_v37, %v877_v17  ;;  %v999_v47 = vsel %vm996_vm0, 1.0, %v3807_v6  ;;  %v3437_v6 = vld [vmem:[%s5003_s4 + $0x10] ss:$8 sps:$4 sm:$0xff]   ;;  %v3440_v38 = vld [vmem:[%s5003_s4 + $0x20] ss:$8 sps:$4 sm:$0xff]  }
  0xe6   : > { %v672_v20 = vsel %vm661_vm6, nan, %v671_v42  ;;  %v879_v30 = vsel %vm661_vm6, nan, %v878_v11  ;;  %v3445_v10 = vld [vmem:[%s5003_s4 + $0x34] ss:$8 sps:$4 sm:$0xff]   ;;  %v3443_v37 = vld [vmem:[%s5003_s4 + $0x30] ss:$8 sps:$4 sm:$0xff]  }
  0xe7   : > { %v983_v27 = vsel %vm548_vm8, %v672_v20, %v879_v30  ;;  %v3448_v17 = vld [vmem:[%s5003_s4 + $0x44] ss:$8 sps:$4 sm:$0xff]   ;;  %v3452_v42 = vld [vmem:[%s5003_s4 + $0x60] ss:$8 sps:$4 sm:$0xff]   ;;  %v3457_v11 = vld [vmem:[%s5003_s4 + $0x74] ss:$8 sps:$4 sm:$0xff]  }
  0xe8   : > { %v1000_v39 = vsel %vm997_vm5, %v983_v27, %v998_v14  ;;  %v3455_v14 = vld [vmem:[%s5003_s4 + $0x70] ss:$8 sps:$4 sm:$0xff]   ;;  %v3472_v30 = vld [vmem:[%s5003_s4 + $0xc4] ss:$8 sps:$4 sm:$0xff]   ;;  %v3481_v27 = vld [vmem:[%s5003_s4 + $0xf4] ss:$8 sps:$4 sm:$0xff]  }
  0xe9   : > { %v3467_v20 = vld [vmem:[%s5003_s4 + $0xb0] ss:$8 sps:$4 sm:$0xff]  }
  0xea   : > { %v3781_v31 = vpop.eup %3780 }
  0xeb   : > { %v3783_v46 = vpop.eup %3782  ;;  %v773_v19 = vxor.u32 2147483648, %v3781_v31 }
  0xec   : > { %v770_v45 = vxor.u32 2147483648, %v3783_v46 }
  0xed   : > { %v774_v49 = vsel %vm772_vm10, %v773_v19, %v3783_v46  ;;  %v980_v24 = vsel %vm978_vm9, %v773_v19, %v3783_v46  ;;  %v3461_v46 = vld [vmem:[%s5003_s4 + $0x90] ss:$8 sps:$4 sm:$0xff]   ;;  %v3466_v19 = vld [vmem:[%s5003_s4 + $0xa4] ss:$8 sps:$4 sm:$0xff]  }
  0xee   : > { %v771_v28 = vsel %vm769_vm11, %v3781_v31, %v770_v45  ;;  %v977_v61 = vsel %vm975_vm13, %v3781_v31, %v770_v45  ;;  %v3460_v31 = vld [vmem:[%s5003_s4 + $0x84] ss:$8 sps:$4 sm:$0xff]   ;;  %v3470_v45 = vld [vmem:[%s5003_s4 + $0xc0] ss:$8 sps:$4 sm:$0xff]  }
  0xef   : > { %v775_v18 = vsel %vm768_vm14, %v771_v28, %v774_v49  ;;  %v981_v2 = vsel %vm974_vm15, %v977_v61, %v980_v24  ;;  %v3475_v49 = vld [vmem:[%s5003_s4 + $0xd4] ss:$8 sps:$4 sm:$0xff]   ;;  %v3473_v24 = vld [vmem:[%s5003_s4 + $0xd0] ss:$8 sps:$4 sm:$0xff]   ;;  %v3478_v28 = vld [vmem:[%s5003_s4 + $0xe4] ss:$8 sps:$4 sm:$0xff]  }
  0xf0   : > { %v776_v3 = vsel %vm765_vm1, nan, %v775_v18  ;;  %v982_v9 = vsel %vm765_vm1, nan, %v981_v2  ;;  %v3476_v61 = vld [vmem:[%s5003_s4 + $0xe0] ss:$8 sps:$4 sm:$0xff]   ;;  %v3479_v18 = vld [vmem:[%s5003_s4 + $0xf0] ss:$8 sps:$4 sm:$0xff]  }
  0xf1   : > { %v984_v13 = vsel %vm548_vm8, %v776_v3, %v982_v9  ;;  %v3484_v2 = vld [vmem:[%s5003_s4 + $0x104] ss:$8 sps:$4 sm:$0xff]   ;;  %v3482_v3 = vld [vmem:[%s5003_s4 + $0x100] ss:$8 sps:$4 sm:$0xff]   ;;  %v3487_v9 = vld [vmem:[%s5003_s4 + $0x114] ss:$8 sps:$4 sm:$0xff]  }
  0xf2   : > { %v1001_v21 = vsel %vm997_vm5, %v984_v13, %v999_v47  ;;  %v3497_v13 = vld [vmem:[%s5003_s4 + $0x150] ss:$8 sps:$4 sm:$0xff]   ;;  %v3502_v47 = vld [vmem:[%s5003_s4 + $0x164] ss:$8 sps:$4 sm:$0xff]  }
  0xf3   : > { %v1121_v32 = vpack.c.bf16 %v1001_v21, %v1000_v39  ;;  %v3500_v39 = vld [vmem:[%s5003_s4 + $0x160] ss:$8 sps:$4 sm:$0xff]   ;;  %v3505_v21 = vld [vmem:[%s5003_s4 + $0x174] ss:$8 sps:$4 sm:$0xff]  }
  0xf5   : > { %1251 = vmatmul.mubr.bf16.vlgmr.msra.gmra.mrb[0].mxu0 %v1121_v32  ;;  %v3508_v32 = vld [vmem:[%s5003_s4 + $0x184] ss:$8 sps:$4 sm:$0xff]  }
  0xf6   : > { %1822 = vmatpush1.bf16.msra.mxu0 %v3434_v29  ;;  %1853 = vmatprep.mubr.bf16.mxu0 %v1003_v52  ;;  %v3503_v29 = vld [vmem:[%s5003_s4 + $0x170] ss:$8 sps:$4 sm:$0xff]   ;;  %v3511_v52 = vld [vmem:[%s5003_s4 + $0x194] ss:$8 sps:$4 sm:$0xff]  }
  0xf7   : > { %1823 = vmatprep.subr.bf16.mxu0 %v3439_v53  ;;  %v3506_v53 = vld [vmem:[%s5003_s4 + $0x180] ss:$8 sps:$4 sm:$0xff]  }
  0xfa   : > { %1824 = vmatpush1.bf16.msra.mxu0 %v3437_v6  ;;  %v3602_v6 = vld [vmem:[%s5005_s6 + $0x4] ss:$28 sps:$4 sm:$0xff]  }
  0xfb   : > { %1825 = vmatprep.subr.bf16.mxu0 %v3442_v4  ;;  %v3604_v4 = vld [vmem:[%s5005_s6] ss:$28 sps:$4 sm:$0xff]   ;;  %2740 = vmatprep.subr.bf16.mxu1 %v3602_v6 }
  0xfc   : > { %2741 = vmatpush1.bf16.msra.mxu1 %v3604_v4  ;;  %v3548_v6 = vld [vmem:[%s5003_s4 + $0x260] ss:$8 sps:$4 sm:$0xff]   ;;  %v3553_v4 = vld [vmem:[%s5003_s4 + $0x274] ss:$8 sps:$4 sm:$0xff]  }
  0xfe   : > { %1826 = vmatpush1.bf16.msra.mxu0 %v3440_v38  ;;  %v3605_v38 = vld [vmem:[%s5005_s6 + $0x3c] ss:$28 sps:$4 sm:$0xff]  }
  0xff   : > { %1827 = vmatprep.subr.bf16.mxu0 %v3445_v10  ;;  %v3509_v10 = vld [vmem:[%s5003_s4 + $0x190] ss:$8 sps:$4 sm:$0xff]   ;;  %2742 = vmatprep.subr.bf16.mxu1 %v3605_v38 }
 0x100   : > { %v3551_v38 = vld [vmem:[%s5003_s4 + $0x270] ss:$8 sps:$4 sm:$0xff]  }
 0x102   : > { %1828 = vmatpush1.bf16.msra.mxu0 %v3443_v37  ;;  %v3514_v37 = vld [vmem:[%s5003_s4 + $0x1a4] ss:$8 sps:$4 sm:$0xff]  }
 0x103   : > { %1829 = vmatprep.subr.bf16.mxu0 %v3448_v17  ;;  %v3607_v17 = vld [vmem:[%s5005_s6 + $0x38] ss:$28 sps:$4 sm:$0xff]  }
 0x104   : > { %2743 = vmatpush1.bf16.msra.mxu1 %v3607_v17  ;;  %v3559_v17 = vld [vmem:[%s5003_s4 + $0x294] ss:$8 sps:$4 sm:$0xff]  }
 0x106   : > { %1830 = vmatpush1.bf16.msra.mxu0 %v3446_v54  ;;  %v3608_v54 = vld [vmem:[%s5005_s6 + $0x74] ss:$28 sps:$4 sm:$0xff]  }
 0x107   : > { %1831 = vmatprep.subr.bf16.mxu0 %v3451_v1  ;;  %v3512_v1 = vld [vmem:[%s5003_s4 + $0x1a0] ss:$8 sps:$4 sm:$0xff]   ;;  %2744 = vmatprep.subr.bf16.mxu1 %v3608_v54  ;;  %v3557_v54 = vld [vmem:[%s5003_s4 + $0x290] ss:$8 sps:$4 sm:$0xff]  }
 0x10a   : > { %1832 = vmatpush1.bf16.msra.mxu0 %v3449_v58  ;;  %v3517_v58 = vld [vmem:[%s5003_s4 + $0x1b4] ss:$8 sps:$4 sm:$0xff]  }
 0x10b   : > { %1833 = vmatprep.subr.bf16.mxu0 %v3454_v34  ;;  %v3610_v34 = vld [vmem:[%s5005_s6 + $0x70] ss:$28 sps:$4 sm:$0xff]  }
 0x10c   : > { %2745 = vmatpush1.bf16.msra.mxu1 %v3610_v34  ;;  %v3565_v34 = vld [vmem:[%s5003_s4 + $0x2b4] ss:$8 sps:$4 sm:$0xff]  }
 0x10e   : > { %1834 = vmatpush1.bf16.msra.mxu0 %v3452_v42  ;;  %v3611_v42 = vld [vmem:[%s5005_s6 + $0xac] ss:$28 sps:$4 sm:$0xff]  }
 0x10f   : > { %1835 = vmatprep.subr.bf16.mxu0 %v3457_v11  ;;  %v3515_v11 = vld [vmem:[%s5003_s4 + $0x1b0] ss:$8 sps:$4 sm:$0xff]   ;;  %2746 = vmatprep.subr.bf16.mxu1 %v3611_v42 }
 0x110   : > { %v3563_v42 = vld [vmem:[%s5003_s4 + $0x2b0] ss:$8 sps:$4 sm:$0xff]  }
 0x112   : > { %1836 = vmatpush1.bf16.msra.mxu0 %v3455_v14  ;;  %v3520_v14 = vld [vmem:[%s5003_s4 + $0x1c4] ss:$8 sps:$4 sm:$0xff]  }
 0x113   : > { %1837 = vmatprep.subr.bf16.mxu0 %v3460_v31  ;;  %v3613_v31 = vld [vmem:[%s5005_s6 + $0xa8] ss:$28 sps:$4 sm:$0xff]  }
 0x114   : > { %2747 = vmatpush1.bf16.msra.mxu1 %v3613_v31  ;;  %v3571_v31 = vld [vmem:[%s5003_s4 + $0x2d4] ss:$8 sps:$4 sm:$0xff]  }
 0x116   : > { %1838 = vmatpush1.bf16.msra.mxu0 %v3458_v59  ;;  %v3614_v59 = vld [vmem:[%s5005_s6 + $0xe4] ss:$28 sps:$4 sm:$0xff]  }
 0x117   : > { %1839 = vmatprep.subr.bf16.mxu0 %v3463_v15  ;;  %v3518_v15 = vld [vmem:[%s5003_s4 + $0x1c0] ss:$8 sps:$4 sm:$0xff]   ;;  %2748 = vmatprep.subr.bf16.mxu1 %v3614_v59  ;;  %v3569_v59 = vld [vmem:[%s5003_s4 + $0x2d0] ss:$8 sps:$4 sm:$0xff]  }
 0x11a   : > { %1840 = vmatpush1.bf16.msra.mxu0 %v3461_v46  ;;  %v3523_v46 = vld [vmem:[%s5003_s4 + $0x1d4] ss:$8 sps:$4 sm:$0xff]  }
 0x11b   : > { %1841 = vmatprep.subr.bf16.mxu0 %v3466_v19  ;;  %v3616_v19 = vld [vmem:[%s5005_s6 + $0xe0] ss:$28 sps:$4 sm:$0xff]  }
 0x11c   : > { %2749 = vmatpush1.bf16.msra.mxu1 %v3616_v19  ;;  %v3577_v19 = vld [vmem:[%s5003_s4 + $0x2f4] ss:$8 sps:$4 sm:$0xff]  }
 0x11e   : > { %1842 = vmatpush1.bf16.msra.mxu0 %v3464_v25  ;;  %v3617_v25 = vld [vmem:[%s5005_s6 + $0x11c] ss:$28 sps:$4 sm:$0xff]  }
 0x11f   : > { %1843 = vmatprep.subr.bf16.mxu0 %v3469_v41  ;;  %v3521_v41 = vld [vmem:[%s5003_s4 + $0x1d0] ss:$8 sps:$4 sm:$0xff]   ;;  %2750 = vmatprep.subr.bf16.mxu1 %v3617_v25 }
 0x120   : > { %v3575_v25 = vld [vmem:[%s5003_s4 + $0x2f0] ss:$8 sps:$4 sm:$0xff]  }
 0x122   : > { %1844 = vmatpush1.bf16.msra.mxu0 %v3467_v20  ;;  %v3526_v20 = vld [vmem:[%s5003_s4 + $0x1e4] ss:$8 sps:$4 sm:$0xff]  }
 0x123   : > { %1845 = vmatprep.subr.bf16.mxu0 %v3472_v30  ;;  %v3619_v30 = vld [vmem:[%s5005_s6 + $0x118] ss:$28 sps:$4 sm:$0xff]  }
 0x124   : > { %2751 = vmatpush1.bf16.msra.mxu1 %v3619_v30  ;;  %v3583_v30 = vld [vmem:[%s5003_s4 + $0x314] ss:$8 sps:$4 sm:$0xff]  }
 0x126   : > { %1846 = vmatpush1.bf16.msra.mxu0 %v3470_v45  ;;  %v3620_v45 = vld [vmem:[%s5005_s6 + $0x154] ss:$28 sps:$4 sm:$0xff]  }
 0x127   : > { %1847 = vmatprep.subr.bf16.mxu0 %v3475_v49  ;;  %v3524_v49 = vld [vmem:[%s5003_s4 + $0x1e0] ss:$8 sps:$4 sm:$0xff]   ;;  %2752 = vmatprep.subr.bf16.mxu1 %v3620_v45  ;;  %v3581_v45 = vld [vmem:[%s5003_s4 + $0x310] ss:$8 sps:$4 sm:$0xff]  }
 0x12a   : > { %1848 = vmatpush1.bf16.msra.mxu0 %v3473_v24  ;;  %v3529_v24 = vld [vmem:[%s5003_s4 + $0x1f4] ss:$8 sps:$4 sm:$0xff]  }
 0x12b   : > { %1849 = vmatprep.subr.bf16.mxu0 %v3478_v28  ;;  %v3622_v28 = vld [vmem:[%s5005_s6 + $0x150] ss:$28 sps:$4 sm:$0xff]  }
 0x12c   : > { %2753 = vmatpush1.bf16.msra.mxu1 %v3622_v28  ;;  %v3595_v28 = vld [vmem:[%s5003_s4 + $0x354] ss:$8 sps:$4 sm:$0xff]  }
 0x12e   : > { %1850 = vmatpush1.bf16.msra.mxu0 %v3476_v61  ;;  %v3623_v61 = vld [vmem:[%s5005_s6 + $0x18c] ss:$28 sps:$4 sm:$0xff]  }
 0x12f   : > { %1851 = vmatprep.subr.bf16.mxu0 %v3481_v27  ;;  %v3527_v27 = vld [vmem:[%s5003_s4 + $0x1f0] ss:$8 sps:$4 sm:$0xff]   ;;  %2754 = vmatprep.subr.bf16.mxu1 %v3623_v61 }
 0x130   : > { %v3593_v61 = vld [vmem:[%s5003_s4 + $0x350] ss:$8 sps:$4 sm:$0xff]  }
 0x132   : > { %1852 = vmatpush1.bf16.msra.mxu0 %v3479_v18  ;;  %v3532_v18 = vld [vmem:[%s5003_s4 + $0x204] ss:$8 sps:$4 sm:$0xff]  }
 0x133   : > { %1864 = vmatprep.subr.bf16.mxu0 %v3484_v2  ;;  %v3625_v2 = vld [vmem:[%s5005_s6 + $0x188] ss:$28 sps:$4 sm:$0xff]  }
 0x134   : > { %2755 = vmatpush1.bf16.msra.mxu1 %v3625_v2  ;;  %v3601_v2 = vld [vmem:[%s5003_s4 + $0x374] ss:$8 sps:$4 sm:$0xff]  }
 0x135   : > { %1854 = vmatmul.mubr.bf16.vlgmr.msra.gmra.mrb[0].mxu0 %v1002_v44  ;;  %v3494_v44 = vld [vmem:[%s5003_s4 + $0x140] ss:$8 sps:$4 sm:$0xff]  }
 0x136   : > { %1865 = vmatpush1.bf16.msra.mxu0 %v3482_v3  ;;  %1896 = vmatprep.mubr.bf16.mxu0 %v1005_v33  ;;  %v3499_v33 = vld [vmem:[%s5003_s4 + $0x154] ss:$8 sps:$4 sm:$0xff]   ;;  %v3626_v3 = vld [vmem:[%s5005_s6 + $0x1c4] ss:$28 sps:$4 sm:$0xff]  }
 0x137   : > { %1866 = vmatprep.subr.bf16.mxu0 %v3487_v9  ;;  %v3530_v9 = vld [vmem:[%s5003_s4 + $0x200] ss:$8 sps:$4 sm:$0xff]   ;;  %2756 = vmatprep.subr.bf16.mxu1 %v3626_v3  ;;  %v3599_v3 = vld [vmem:[%s5003_s4 + $0x370] ss:$8 sps:$4 sm:$0xff]  }
 0x13a   : > { %1867 = vmatpush1.bf16.msra.mxu0 %v3485_v48  ;;  %v3535_v48 = vld [vmem:[%s5003_s4 + $0x214] ss:$8 sps:$4 sm:$0xff]  }
 0x13b   : > { %1868 = vmatprep.subr.bf16.mxu0 %v3490_v12  ;;  %v3628_v12 = vld [vmem:[%s5005_s6 + $0x1c0] ss:$28 sps:$4 sm:$0xff]  }
 0x13c   : > { %2757 = vmatpush1.bf16.msra.mxu1 %v3628_v12  ;;  %v3647_v12 = vld [vmem:[%s5005_s6 + $0x34c] ss:$28 sps:$4 sm:$0xff]  }
 0x13e   : > { %1869 = vmatpush1.bf16.msra.mxu0 %v3488_v63  ;;  %v3629_v63 = vld [vmem:[%s5005_s6 + $0x1fc] ss:$28 sps:$4 sm:$0xff]  }
 0x13f   : > { %1870 = vmatprep.subr.bf16.mxu0 %v3493_v22  ;;  %v3533_v22 = vld [vmem:[%s5003_s4 + $0x210] ss:$8 sps:$4 sm:$0xff]   ;;  %2758 = vmatprep.subr.bf16.mxu1 %v3629_v63  ;;  %v3649_v63 = vld [vmem:[%s5005_s6 + $0x348] ss:$28 sps:$4 sm:$0xff]  }
 0x140   : > { %2759 = vmatpush1.bf16.msra.mxu1 %v3631_v50 }
 0x142   : > { %1871 = vmatpush1.bf16.msra.mxu0 %v3491_v26  ;;  %v3635_v26 = vld [vmem:[%s5005_s6 + $0x26c] ss:$28 sps:$4 sm:$0xff]  }
 0x143   : > { %1872 = vmatprep.subr.bf16.mxu0 %v3496_v43  ;;  %v3539_v43 = vld [vmem:[%s5003_s4 + $0x230] ss:$8 sps:$4 sm:$0xff]  }
 0x146   : > { %1873 = vmatpush1.bf16.msra.mxu0 %v3494_v44  ;;  %v3544_v44 = vld [vmem:[%s5003_s4 + $0x244] ss:$8 sps:$4 sm:$0xff]  }
 0x147   : > { %1874 = vmatprep.subr.bf16.mxu0 %v3499_v33  ;;  %v3637_v33 = vld [vmem:[%s5005_s6 + $0x268] ss:$28 sps:$4 sm:$0xff]  }
 0x14a   : > { %1875 = vmatpush1.bf16.msra.mxu0 %v3497_v13  ;;  %v3638_v13 = vld [vmem:[%s5005_s6 + $0x2a4] ss:$28 sps:$4 sm:$0xff]  }
 0x14b   : > { %1876 = vmatprep.subr.bf16.mxu0 %v3502_v47  ;;  %v3542_v47 = vld [vmem:[%s5003_s4 + $0x240] ss:$8 sps:$4 sm:$0xff]  }
 0x14e   : > { %1877 = vmatpush1.bf16.msra.mxu0 %v3500_v39  ;;  %v3547_v39 = vld [vmem:[%s5003_s4 + $0x254] ss:$8 sps:$4 sm:$0xff]  }
 0x14f   : > { %1878 = vmatprep.subr.bf16.mxu0 %v3505_v21  ;;  %v3640_v21 = vld [vmem:[%s5005_s6 + $0x2a0] ss:$28 sps:$4 sm:$0xff]  }
 0x152   : > { %1879 = vmatpush1.bf16.msra.mxu0 %v3503_v29  ;;  %v3641_v29 = vld [vmem:[%s5005_s6 + $0x2dc] ss:$28 sps:$4 sm:$0xff]  }
 0x153   : > { %1880 = vmatprep.subr.bf16.mxu0 %v3508_v32  ;;  %v3545_v32 = vld [vmem:[%s5003_s4 + $0x250] ss:$8 sps:$4 sm:$0xff]  }
 0x156   : > { %1881 = vmatpush1.bf16.msra.mxu0 %v3506_v53  ;;  %v3550_v53 = vld [vmem:[%s5003_s4 + $0x264] ss:$8 sps:$4 sm:$0xff]  }
 0x157   : > { %1882 = vmatprep.subr.bf16.mxu0 %v3511_v52  ;;  %v3643_v52 = vld [vmem:[%s5005_s6 + $0x2d8] ss:$28 sps:$4 sm:$0xff]  }
 0x15a   : > { %1883 = vmatpush1.bf16.msra.mxu0 %v3509_v10  ;;  %v3556_v10 = vld [vmem:[%s5003_s4 + $0x284] ss:$8 sps:$4 sm:$0xff]  }
 0x15b   : > { %1884 = vmatprep.subr.bf16.mxu0 %v3514_v37  ;;  %v3554_v37 = vld [vmem:[%s5003_s4 + $0x280] ss:$8 sps:$4 sm:$0xff]  }
 0x15e   : > { %1885 = vmatpush1.bf16.msra.mxu0 %v3512_v1  ;;  %v3562_v1 = vld [vmem:[%s5003_s4 + $0x2a4] ss:$8 sps:$4 sm:$0xff]  }
 0x15f   : > { %1886 = vmatprep.subr.bf16.mxu0 %v3517_v58  ;;  %v3560_v58 = vld [vmem:[%s5003_s4 + $0x2a0] ss:$8 sps:$4 sm:$0xff]  }
 0x162   : > { %1887 = vmatpush1.bf16.msra.mxu0 %v3515_v11  ;;  %v3568_v11 = vld [vmem:[%s5003_s4 + $0x2c4] ss:$8 sps:$4 sm:$0xff]  }
 0x163   : > { %1888 = vmatprep.subr.bf16.mxu0 %v3520_v14  ;;  %v3566_v14 = vld [vmem:[%s5003_s4 + $0x2c0] ss:$8 sps:$4 sm:$0xff]  }
 0x166   : > { %1889 = vmatpush1.bf16.msra.mxu0 %v3518_v15  ;;  %v3574_v15 = vld [vmem:[%s5003_s4 + $0x2e4] ss:$8 sps:$4 sm:$0xff]  }
 0x167   : > { %1890 = vmatprep.subr.bf16.mxu0 %v3523_v46  ;;  %v3572_v46 = vld [vmem:[%s5003_s4 + $0x2e0] ss:$8 sps:$4 sm:$0xff]  }
 0x16a   : > { %1891 = vmatpush1.bf16.msra.mxu0 %v3521_v41  ;;  %v3580_v41 = vld [vmem:[%s5003_s4 + $0x304] ss:$8 sps:$4 sm:$0xff]  }
 0x16b   : > { %1892 = vmatprep.subr.bf16.mxu0 %v3526_v20  ;;  %v3578_v20 = vld [vmem:[%s5003_s4 + $0x300] ss:$8 sps:$4 sm:$0xff]  }
 0x16e   : > { %1893 = vmatpush1.bf16.msra.mxu0 %v3524_v49  ;;  %v3586_v49 = vld [vmem:[%s5003_s4 + $0x324] ss:$8 sps:$4 sm:$0xff]  }
 0x16f   : > { %1894 = vmatprep.subr.bf16.mxu0 %v3529_v24  ;;  %v3584_v24 = vld [vmem:[%s5003_s4 + $0x320] ss:$8 sps:$4 sm:$0xff]  }
 0x172   : > { %1895 = vmatpush1.bf16.msra.mxu0 %v3527_v27  ;;  %v3598_v27 = vld [vmem:[%s5003_s4 + $0x364] ss:$8 sps:$4 sm:$0xff]  }
 0x173   : > { %1907 = vmatprep.subr.bf16.mxu0 %v3532_v18  ;;  %v3596_v18 = vld [vmem:[%s5003_s4 + $0x360] ss:$8 sps:$4 sm:$0xff]  }
 0x175   : > { %1897 = vmatmul.mubr.bf16.vlgmr.msra.gmra.mrb[0].mxu0 %v1004_v35  ;;  %v3632_v35 = vld [vmem:[%s5005_s6 + $0x234] ss:$28 sps:$4 sm:$0xff]  }
 0x176   : > { %1908 = vmatpush1.bf16.msra.mxu0 %v3530_v9  ;;  %1939 = vmatprep.mubr.bf16.mxu0 %v1007_v62  ;;  %v3634_v62 = vld [vmem:[%s5005_s6 + $0x230] ss:$28 sps:$4 sm:$0xff]  }
 0x177   : > { %1909 = vmatprep.subr.bf16.mxu0 %v3535_v48  ;;  %2760 = vmatprep.subr.bf16.mxu1 %v3632_v35  ;;  %v3644_v9 = vld [vmem:[%s5005_s6 + $0x314] ss:$28 sps:$4 sm:$0xff]  }
 0x178   : > { %2761 = vmatpush1.bf16.msra.mxu1 %v3634_v62  ;;  %v3646_v48 = vld [vmem:[%s5005_s6 + $0x310] ss:$28 sps:$4 sm:$0xff]  }
 0x179   : > { %2762 = vmatprep.subr.bf16.mxu1 %v3635_v26 }
 0x17a   : > { %1910 = vmatpush1.bf16.msra.mxu0 %v3533_v22 }
 0x17b   : > { %1911 = vmatprep.subr.bf16.mxu0 %v3538_v55 }
 0x17c   : > { %2763 = vmatpush1.bf16.msra.mxu1 %v3637_v33  ;;  %v3653_v33 = vld [vmem:[%s5005_s6 + $0x40] ss:$28 sps:$4 sm:$0xff]  }
 0x17d   : > { %2764 = vmatprep.subr.bf16.mxu1 %v3638_v13  ;;  %v3658_v13 = vld [vmem:[%s5005_s6 + $0x7c] ss:$28 sps:$4 sm:$0xff]  }
 0x17e   : > { %1912 = vmatpush1.bf16.msra.mxu0 %v3536_v16 }
 0x17f   : > { %1913 = vmatprep.subr.bf16.mxu0 %v3541_v57 }
 0x180   : > { %2765 = vmatpush1.bf16.msra.mxu1 %v3640_v21  ;;  %v3659_v21 = vld [vmem:[%s5005_s6 + $0xb0] ss:$28 sps:$4 sm:$0xff]  }
 0x181   : > { %2766 = vmatprep.subr.bf16.mxu1 %v3641_v29  ;;  %v3664_v29 = vld [vmem:[%s5005_s6 + $0xec] ss:$28 sps:$4 sm:$0xff]  }
 0x182   : > { %1914 = vmatpush1.bf16.msra.mxu0 %v3539_v43  ;;  %v3650_v43 = vld [vmem:[%s5005_s6 + $0x8] ss:$28 sps:$4 sm:$0xff]  }
 0x183   : > { %1915 = vmatprep.subr.bf16.mxu0 %v3544_v44  ;;  %v3655_v44 = vld [vmem:[%s5005_s6 + $0x44] ss:$28 sps:$4 sm:$0xff]  }
 0x184   : > { %2767 = vmatpush1.bf16.msra.mxu1 %v3643_v52  ;;  %v3665_v52 = vld [vmem:[%s5005_s6 + $0x120] ss:$28 sps:$4 sm:$0xff]  }
 0x185   : > { %2768 = vmatprep.subr.bf16.mxu1 %v3644_v9  ;;  %v3719_v9 = vld [vmem:[%s5005_s6 + $0x198] ss:$28 sps:$4 sm:$0xff]  }
 0x186   : > { %1916 = vmatpush1.bf16.msra.mxu0 %v3542_v47  ;;  %v3656_v47 = vld [vmem:[%s5005_s6 + $0x78] ss:$28 sps:$4 sm:$0xff]  }
 0x187   : > { %1917 = vmatprep.subr.bf16.mxu0 %v3547_v39  ;;  %v3661_v39 = vld [vmem:[%s5005_s6 + $0xb4] ss:$28 sps:$4 sm:$0xff]  }
 0x188   : > { %2769 = vmatpush1.bf16.msra.mxu1 %v3646_v48  ;;  %v3724_v48 = vld [vmem:[%s5005_s6 + $0x1d4] ss:$28 sps:$4 sm:$0xff]  }
 0x189   : > { %2770 = vmatprep.subr.bf16.mxu1 %v3647_v12  ;;  %v3722_v12 = vld [vmem:[%s5005_s6 + $0x1d0] ss:$28 sps:$4 sm:$0xff]  }
 0x18a   : > { %1918 = vmatpush1.bf16.msra.mxu0 %v3545_v32  ;;  %v3662_v32 = vld [vmem:[%s5005_s6 + $0xe8] ss:$28 sps:$4 sm:$0xff]  }
 0x18b   : > { %1919 = vmatprep.subr.bf16.mxu0 %v3550_v53  ;;  %v3667_v53 = vld [vmem:[%s5005_s6 + $0x124] ss:$28 sps:$4 sm:$0xff]  }
 0x18c   : > { %2771 = vmatpush1.bf16.msra.mxu1 %v3649_v63  ;;  %v3727_v63 = vld [vmem:[%s5005_s6 + $0x20c] ss:$28 sps:$4 sm:$0xff]  }
 0x18d   : > { %2783 = vmatprep.subr.bf16.mxu1 %v3652_v5  ;;  %v3725_v5 = vld [vmem:[%s5005_s6 + $0x208] ss:$28 sps:$4 sm:$0xff]  }
 0x18e   : > { %1920 = vmatpush1.bf16.msra.mxu0 %v3548_v6  ;;  %v3670_v6 = vld [vmem:[%s5005_s6 + $0x15c] ss:$28 sps:$4 sm:$0xff]  }
 0x18f   : > { %1921 = vmatprep.subr.bf16.mxu0 %v3553_v4  ;;  %v3668_v4 = vld [vmem:[%s5005_s6 + $0x158] ss:$28 sps:$4 sm:$0xff]  }
 0x192   : > { %1922 = vmatpush1.bf16.msra.mxu0 %v3551_v38  ;;  %v3673_v38 = vld [vmem:[%s5005_s6 + $0x194] ss:$28 sps:$4 sm:$0xff]  }
 0x193   : > { %1923 = vmatprep.subr.bf16.mxu0 %v3556_v10  ;;  %v3671_v10 = vld [vmem:[%s5005_s6 + $0x190] ss:$28 sps:$4 sm:$0xff]  }
 0x196   : > { %1924 = vmatpush1.bf16.msra.mxu0 %v3554_v37  ;;  %v3676_v37 = vld [vmem:[%s5005_s6 + $0x1cc] ss:$28 sps:$4 sm:$0xff]  }
 0x197   : > { %1925 = vmatprep.subr.bf16.mxu0 %v3559_v17  ;;  %v3674_v17 = vld [vmem:[%s5005_s6 + $0x1c8] ss:$28 sps:$4 sm:$0xff]  }
 0x19a   : > { %1926 = vmatpush1.bf16.msra.mxu0 %v3557_v54  ;;  %v3679_v54 = vld [vmem:[%s5005_s6 + $0x204] ss:$28 sps:$4 sm:$0xff]  }
 0x19b   : > { %1927 = vmatprep.subr.bf16.mxu0 %v3562_v1  ;;  %v3677_v1 = vld [vmem:[%s5005_s6 + $0x200] ss:$28 sps:$4 sm:$0xff]  }
 0x19e   : > { %1928 = vmatpush1.bf16.msra.mxu0 %v3560_v58  ;;  %v3682_v58 = vld [vmem:[%s5005_s6 + $0x23c] ss:$28 sps:$4 sm:$0xff]  }
 0x19f   : > { %1929 = vmatprep.subr.bf16.mxu0 %v3565_v34  ;;  %v3680_v34 = vld [vmem:[%s5005_s6 + $0x238] ss:$28 sps:$4 sm:$0xff]  }
 0x1a2   : > { %1930 = vmatpush1.bf16.msra.mxu0 %v3563_v42  ;;  %v3685_v42 = vld [vmem:[%s5005_s6 + $0x274] ss:$28 sps:$4 sm:$0xff]  }
 0x1a3   : > { %1931 = vmatprep.subr.bf16.mxu0 %v3568_v11  ;;  %v3683_v11 = vld [vmem:[%s5005_s6 + $0x270] ss:$28 sps:$4 sm:$0xff]  }
 0x1a6   : > { %1932 = vmatpush1.bf16.msra.mxu0 %v3566_v14  ;;  %v3688_v14 = vld [vmem:[%s5005_s6 + $0x2ac] ss:$28 sps:$4 sm:$0xff]  }
 0x1a7   : > { %1933 = vmatprep.subr.bf16.mxu0 %v3571_v31  ;;  %v3686_v31 = vld [vmem:[%s5005_s6 + $0x2a8] ss:$28 sps:$4 sm:$0xff]  }
 0x1aa   : > { %1934 = vmatpush1.bf16.msra.mxu0 %v3569_v59  ;;  %v3691_v59 = vld [vmem:[%s5005_s6 + $0x2e4] ss:$28 sps:$4 sm:$0xff]  }
 0x1ab   : > { %1935 = vmatprep.subr.bf16.mxu0 %v3574_v15  ;;  %v3689_v15 = vld [vmem:[%s5005_s6 + $0x2e0] ss:$28 sps:$4 sm:$0xff]  }
 0x1ae   : > { %1936 = vmatpush1.bf16.msra.mxu0 %v3572_v46  ;;  %v3694_v46 = vld [vmem:[%s5005_s6 + $0x31c] ss:$28 sps:$4 sm:$0xff]  }
 0x1af   : > { %1937 = vmatprep.subr.bf16.mxu0 %v3577_v19  ;;  %v3692_v19 = vld [vmem:[%s5005_s6 + $0x318] ss:$28 sps:$4 sm:$0xff]  }
 0x1b2   : > { %1938 = vmatpush1.bf16.msra.mxu0 %v3575_v25  ;;  %v3697_v25 = vld [vmem:[%s5005_s6 + $0x354] ss:$28 sps:$4 sm:$0xff]  }
 0x1b3   : > { %1950 = vmatprep.subr.bf16.mxu0 %v3580_v41  ;;  %v3695_v41 = vld [vmem:[%s5005_s6 + $0x350] ss:$28 sps:$4 sm:$0xff]  }
 0x1b5   : > { %1940 = vmatmul.mubr.bf16.vlgmr.msra.gmra.mrb[0].mxu0 %v1006_v40  ;;  %v3590_v40 = vld [vmem:[%s5003_s4 + $0x340] ss:$8 sps:$4 sm:$0xff]  }
 0x1b6   : > { %1951 = vmatpush1.bf16.msra.mxu0 %v3578_v20  ;;  %1982 = vmatprep.mubr.bf16.mxu0 %v3806_v0  ;;  %v3587_v0 = vld [vmem:[%s5003_s4 + $0x330] ss:$8 sps:$4 sm:$0xff]  }
 0x1b7   : > { %1952 = vmatprep.subr.bf16.mxu0 %v3583_v30  ;;  %v3700_v20 = vld [vmem:[%s5005_s6 + $0x14] ss:$28 sps:$4 sm:$0xff]  }
 0x1b8   : > { %v3698_v30 = vld [vmem:[%s5005_s6 + $0x10] ss:$28 sps:$4 sm:$0xff]  }
 0x1ba   : > { %1953 = vmatpush1.bf16.msra.mxu0 %v3581_v45  ;;  %v3703_v45 = vld [vmem:[%s5005_s6 + $0x4c] ss:$28 sps:$4 sm:$0xff]  }
 0x1bb   : > { %1954 = vmatprep.subr.bf16.mxu0 %v3586_v49  ;;  %v3701_v49 = vld [vmem:[%s5005_s6 + $0x48] ss:$28 sps:$4 sm:$0xff]  }
 0x1be   : > { %1955 = vmatpush1.bf16.msra.mxu0 %v3584_v24  ;;  %v3706_v24 = vld [vmem:[%s5005_s6 + $0x84] ss:$28 sps:$4 sm:$0xff]  }
 0x1bf   : > { %1956 = vmatprep.subr.bf16.mxu0 %v3589_v36  ;;  %v3704_v36 = vld [vmem:[%s5005_s6 + $0x80] ss:$28 sps:$4 sm:$0xff]  }
 0x1c2   : > { %1957 = vmatpush1.bf16.msra.mxu0 %v3587_v0  ;;  %v3709_v0 = vld [vmem:[%s5005_s6 + $0xbc] ss:$28 sps:$4 sm:$0xff]  }
 0x1c3   : > { %1958 = vmatprep.subr.bf16.mxu0 %v3592_v56  ;;  %v3707_v56 = vld [vmem:[%s5005_s6 + $0xb8] ss:$28 sps:$4 sm:$0xff]  }
 0x1c6   : > { %1959 = vmatpush1.bf16.msra.mxu0 %v3590_v40  ;;  %v3712_v40 = vld [vmem:[%s5005_s6 + $0xf4] ss:$28 sps:$4 sm:$0xff]  }
 0x1c7   : > { %1960 = vmatprep.subr.bf16.mxu0 %v3595_v28  ;;  %v3710_v28 = vld [vmem:[%s5005_s6 + $0xf0] ss:$28 sps:$4 sm:$0xff]  }
 0x1ca   : > { %1961 = vmatpush1.bf16.msra.mxu0 %v3593_v61  ;;  %v3715_v61 = vld [vmem:[%s5005_s6 + $0x12c] ss:$28 sps:$4 sm:$0xff]  }
 0x1cb   : > { %1962 = vmatprep.subr.bf16.mxu0 %v3598_v27  ;;  %v3713_v27 = vld [vmem:[%s5005_s6 + $0x128] ss:$28 sps:$4 sm:$0xff]  }
 0x1ce   : > { %1963 = vmatpush1.bf16.msra.mxu0 %v3596_v18  ;;  %v3718_v18 = vld [vmem:[%s5005_s6 + $0x164] ss:$28 sps:$4 sm:$0xff]  }
 0x1cf   : > { %1964 = vmatprep.subr.bf16.mxu0 %v3601_v2  ;;  %v3716_v2 = vld [vmem:[%s5005_s6 + $0x160] ss:$28 sps:$4 sm:$0xff]  }
 0x1d2   : > { %1965 = vmatpush1.bf16.msra.mxu0 %v3599_v3  ;;  %v3721_v3 = vld [vmem:[%s5005_s6 + $0x19c] ss:$28 sps:$4 sm:$0xff]  }
 0x1d5   : > { %1983 = vmatmul.mubr.bf16.vlgmr.msra.gmra.mrb[0].mxu0 %v1008_v23 }
 0x2a8   : > { %v1984_v51 = vpop.f32.mrb[0].mxu0 }
 0x2a9   : > { %v1986_v23 = vpop.f32.mrb[1].mxu0  ;;  %v1993_v55 = vmax.f32 %v1984_v51, 0.0  ;;  %v3730_v51 = vld [vmem:[%s5005_s6 + $0x244] ss:$28 sps:$4 sm:$0xff]  }
 0x2aa   : > { %v1988_v22 = vpop.f32.mrb[2].mxu0  ;;  %v1994_v16 = vmax.f32 %v1986_v23, 0.0  ;;  %v3728_v23 = vld [vmem:[%s5005_s6 + $0x240] ss:$28 sps:$4 sm:$0xff]  }
 0x2ab   : > { %v1995_v50 = vmax.f32 %v1988_v22, 0.0  ;;  %v1990_v35 = vpop.f32.mrb[3].mxu0  ;;  %v3733_v22 = vld [vmem:[%s5005_s6 + $0x27c] ss:$28 sps:$4 sm:$0xff]  }
 0x2ac   : > { %v1996_v57 = vmax.f32 %v1990_v35, 0.0  ;;  %v3734_v35 = vld [vmem:[%s5005_s6 + $0x2b0] ss:$28 sps:$4 sm:$0xff]  }
 0x2ad   : > { %v4695_v62 = vpack.c.bf16 %v1995_v50, %v1993_v55  ;;  %v3731_v55 = vld [vmem:[%s5005_s6 + $0x278] ss:$28 sps:$4 sm:$0xff]  }
 0x2ae   : > { %v4697_v26 = vpack.c.bf16 %v1996_v57, %v1994_v16  ;;  %v3736_v50 = vld [vmem:[%s5005_s6 + $0x2b4] ss:$28 sps:$4 sm:$0xff]   ;;  %v3739_v16 = vld [vmem:[%s5005_s6 + $0x2ec] ss:$28 sps:$4 sm:$0xff]  }
 0x2af   : > { %v3737_v57 = vld [vmem:[%s5005_s6 + $0x2e8] ss:$28 sps:$4 sm:$0xff]  }
 0x2b0   : > { %2772 = vmatprep.mubr.bf16.mxu1 %v4697_v26 }
 0x2b1   : > { %2773 = vmatmul.mubr.bf16.vlgmr.msra.gmra.mrb[0].mxu1 %v4695_v62 }
 0x2b2   : > { %2784 = vmatpush1.bf16.msra.mxu1 %v3650_v43  ;;  %2815 = vmatprep.mubr.bf16.mxu1 %v4697_v26  ;;  %v3742_v43 = vld [vmem:[%s5005_s6 + $0x324] ss:$28 sps:$4 sm:$0xff]  }
 0x2b3   : > { %2785 = vmatprep.subr.bf16.mxu1 %v3655_v44  ;;  %v3740_v44 = vld [vmem:[%s5005_s6 + $0x320] ss:$28 sps:$4 sm:$0xff]  }
 0x2b6   : > { %2786 = vmatpush1.bf16.msra.mxu1 %v3653_v33  ;;  %v3745_v33 = vld [vmem:[%s5005_s6 + $0x35c] ss:$28 sps:$4 sm:$0xff]  }
 0x2b7   : > { %2787 = vmatprep.subr.bf16.mxu1 %v3658_v13  ;;  %v3743_v13 = vld [vmem:[%s5005_s6 + $0x358] ss:$28 sps:$4 sm:$0xff]  }
 0x2ba   : > { %2788 = vmatpush1.bf16.msra.mxu1 %v3656_v47  ;;  %v3746_v47 = vld [vmem:[%s5005_s6 + $0x1d8] ss:$28 sps:$4 sm:$0xff]  }
 0x2bb   : > { %2789 = vmatprep.subr.bf16.mxu1 %v3661_v39  ;;  %v3747_v39 = vld [vmem:[%s5005_s6 + $0x18] ss:$28 sps:$4 sm:$0xff]  }
 0x2be   : > { %2790 = vmatpush1.bf16.msra.mxu1 %v3659_v21  ;;  %v3748_v21 = vld [vmem:[%s5005_s6 + $0x210] ss:$28 sps:$4 sm:$0xff]  }
 0x2bf   : > { %2791 = vmatprep.subr.bf16.mxu1 %v3664_v29  ;;  %v3749_v29 = vld [vmem:[%s5005_s6 + $0x50] ss:$28 sps:$4 sm:$0xff]  }
 0x2c2   : > { %2792 = vmatpush1.bf16.msra.mxu1 %v3662_v32  ;;  %v3750_v32 = vld [vmem:[%s5005_s6 + $0x248] ss:$28 sps:$4 sm:$0xff]  }
 0x2c3   : > { %2793 = vmatprep.subr.bf16.mxu1 %v3667_v53  ;;  %v3751_v53 = vld [vmem:[%s5005_s6 + $0x88] ss:$28 sps:$4 sm:$0xff]  }
 0x2c6   : > { %2794 = vmatpush1.bf16.msra.mxu1 %v3665_v52  ;;  %v3752_v52 = vld [vmem:[%s5005_s6 + $0x280] ss:$28 sps:$4 sm:$0xff]  }
 0x2c7   : > { %2795 = vmatprep.subr.bf16.mxu1 %v3670_v6  ;;  %v3754_v6 = vld [vmem:[%s5005_s6 + $0x2b8] ss:$28 sps:$4 sm:$0xff]  }
 0x2ca   : > { %2796 = vmatpush1.bf16.msra.mxu1 %v3668_v4  ;;  %v3755_v4 = vld [vmem:[%s5005_s6 + $0xf8] ss:$28 sps:$4 sm:$0xff]  }
 0x2cb   : > { %2797 = vmatprep.subr.bf16.mxu1 %v3673_v38  ;;  %v3756_v38 = vld [vmem:[%s5005_s6 + $0x2f0] ss:$28 sps:$4 sm:$0xff]  }
 0x2ce   : > { %2798 = vmatpush1.bf16.msra.mxu1 %v3671_v10  ;;  %v3757_v10 = vld [vmem:[%s5005_s6 + $0x130] ss:$28 sps:$4 sm:$0xff]  }
 0x2cf   : > { %2799 = vmatprep.subr.bf16.mxu1 %v3676_v37  ;;  %v3758_v37 = vld [vmem:[%s5005_s6 + $0x328] ss:$28 sps:$4 sm:$0xff]  }
 0x2d2   : > { %2800 = vmatpush1.bf16.msra.mxu1 %v3674_v17  ;;  %v3759_v17 = vld [vmem:[%s5005_s6 + $0x168] ss:$28 sps:$4 sm:$0xff]  }
 0x2d3   : > { %2801 = vmatprep.subr.bf16.mxu1 %v3679_v54  ;;  %v3760_v54 = vld [vmem:[%s5005_s6 + $0x360] ss:$28 sps:$4 sm:$0xff]  }
 0x2d6   : > { %2802 = vmatpush1.bf16.msra.mxu1 %v3677_v1  ;;  %v3761_v1 = vld [vmem:[%s5005_s6 + $0x1a0] ss:$28 sps:$4 sm:$0xff]  }
 0x2d7   : > { %2803 = vmatprep.subr.bf16.mxu1 %v3682_v58  ;;  %v2131_v58 = vsub.s32 0, %v3900_v60 }
 0x2da   : > { %2804 = vmatpush1.bf16.msra.mxu1 %v3680_v34  ;;  %v4948_v34 = vld [vmem:[%s5006_s7] sm:$0xff] }
 0x2db   : > { %2805 = vmatprep.subr.bf16.mxu1 %v3685_v42  ;;  %v2135_v42 = vsub.s32 1, %v3900_v60 }
 0x2de   : > { %2806 = vmatpush1.bf16.msra.mxu1 %v3683_v11  ;;  %v2132_v11 = vrot.slane %v4948_v34, %v2131_v58 }
 0x2df   : > { %2807 = vmatprep.subr.bf16.mxu1 %v3688_v14  ;;  %v2136_v14 = vrot.slane %v4948_v34, %v2135_v42 }
 0x2e2   : > { %2808 = vmatpush1.bf16.msra.mxu1 %v3686_v31 }
 0x2e3   : > { %2809 = vmatprep.subr.bf16.mxu1 %v3691_v59 }
 0x2e6   : > { %2810 = vmatpush1.bf16.msra.mxu1 %v3689_v15 }
 0x2e7   : > { %2811 = vmatprep.subr.bf16.mxu1 %v3694_v46 }
 0x2ea   : > { %2812 = vmatpush1.bf16.msra.mxu1 %v3692_v19  ;;  %v3784_v19 = vld [vmem:[%s4073_s18] sm:$0xff] }
 0x2eb   : > { %2813 = vmatprep.subr.bf16.mxu1 %v3697_v25 }
 0x2ee   : > { %2814 = vmatpush1.bf16.msra.mxu1 %v3695_v41 }
 0x2ef   : > { %2826 = vmatprep.subr.bf16.mxu1 %v3700_v20 }
 0x2f1   : > { %2816 = vmatmul.mubr.bf16.vlgmr.msra.gmra.mrb[4].mxu1 %v4695_v62 }
 0x2f2   : > { %2827 = vmatpush1.bf16.msra.mxu1 %v3698_v30  ;;  %2858 = vmatprep.mubr.bf16.mxu1 %v4697_v26  ;;  %v3785_v30 = vld [vmem:[%s4073_s18 + $0x8] sm:$0xff] }
 0x2f3   : > { %2828 = vmatprep.subr.bf16.mxu1 %v3703_v45 }
 0x2f6   : > { %2829 = vmatpush1.bf16.msra.mxu1 %v3701_v49 }
 0x2f7   : > { %2830 = vmatprep.subr.bf16.mxu1 %v3706_v24 }
 0x2fa   : > { %2831 = vmatpush1.bf16.msra.mxu1 %v3704_v36  ;;  %v3786_v36 = vld [vmem:[%s4073_s18 + $0x38] sm:$0xff] }
 0x2fb   : > { %2832 = vmatprep.subr.bf16.mxu1 %v3709_v0 }
 0x2fe   : > { %2833 = vmatpush1.bf16.msra.mxu1 %v3707_v56 }
 0x2ff   : > { %2834 = vmatprep.subr.bf16.mxu1 %v3712_v40  ;;  %v3787_v40 = vld [vmem:[%s4073_s18 + $0x40] sm:$0xff] }
 0x302   : > { %2835 = vmatpush1.bf16.msra.mxu1 %v3710_v28 }
 0x303   : > { %2836 = vmatprep.subr.bf16.mxu1 %v3715_v61 }
 0x306   : > { %2837 = vmatpush1.bf16.msra.mxu1 %v3713_v27 }
 0x307   : > { %2838 = vmatprep.subr.bf16.mxu1 %v3718_v18 }
 0x30a   : > { %2839 = vmatpush1.bf16.msra.mxu1 %v3716_v2 }
 0x30b   : > { %2840 = vmatprep.subr.bf16.mxu1 %v3721_v3 }
 0x30e   : > { %2841 = vmatpush1.bf16.msra.mxu1 %v3719_v9 }
 0x30f   : > { %2842 = vmatprep.subr.bf16.mxu1 %v3724_v48 }
 0x312   : > { %2843 = vmatpush1.bf16.msra.mxu1 %v3722_v12 }
 0x313   : > { %2844 = vmatprep.subr.bf16.mxu1 %v3727_v63  ;;  %v2139_v63 = vsub.s32 2, %v3900_v60 }
 0x316   : > { %2845 = vmatpush1.bf16.msra.mxu1 %v3725_v5  ;;  %v2143_v5 = vsub.s32 3, %v3900_v60 }
 0x317   : > { %2846 = vmatprep.subr.bf16.mxu1 %v3730_v51  ;;  %v2140_v51 = vrot.slane %v4948_v34, %v2139_v63 }
 0x31a   : > { %2847 = vmatpush1.bf16.msra.mxu1 %v3728_v23  ;;  %v2144_v23 = vrot.slane %v4948_v34, %v2143_v5 }
 0x31b   : > { %2848 = vmatprep.subr.bf16.mxu1 %v3733_v22 }
 0x31e   : > { %2849 = vmatpush1.bf16.msra.mxu1 %v3731_v55 }
 0x31f   : > { %2850 = vmatprep.subr.bf16.mxu1 %v3736_v50 }
 0x322   : > { %2851 = vmatpush1.bf16.msra.mxu1 %v3734_v35 }
 0x323   : > { %2852 = vmatprep.subr.bf16.mxu1 %v3739_v16 }
 0x326   : > { %2853 = vmatpush1.bf16.msra.mxu1 %v3737_v57  ;;  %v3788_v57 = vld [vmem:[%s4073_s18 + $0x10] sm:$0xff] }
 0x327   : > { %2854 = vmatprep.subr.bf16.mxu1 %v3742_v43 }
 0x32a   : > { %2855 = vmatpush1.bf16.msra.mxu1 %v3740_v44 }
 0x32b   : > { %2856 = vmatprep.subr.bf16.mxu1 %v3745_v33 }
 0x32e   : > { %2857 = vmatpush1.bf16.msra.mxu1 %v3743_v13  ;;  %v3789_v13 = vld [vmem:[%s4073_s18 + $0x18] sm:$0xff] }
 0x32f   : > { %3344 = vmatprep.subr.bf16.mxu1 %v3746_v47 }
 0x331   : > { %2859 = vmatmul.mubr.bf16.vlgmr.msra.gmra.mrb[8].mxu1 %v4695_v62 }
 0x332   : > { %3345 = vmatpush3.bf16.msra.mxu1 %v3747_v39  ;;  %2901 = vmatprep.mubr.bf16.mxu1 %v4697_v26  ;;  %v3753_v26 = vld [vmem:[%s5005_s6 + $0xc0] ss:$28 sps:$4 sm:$0xff]  }
 0x333   : > { %3346 = vmatprep.subr.bf16.mxu1 %v3748_v21 }
 0x336   : > { %3347 = vmatpush3.bf16.msra.mxu1 %v3749_v29  ;;  %v3790_v29 = vld [vmem:[%s4073_s18 + $0x48] sm:$0xff] }
 0x337   : > { %3348 = vmatprep.subr.bf16.mxu1 %v3750_v32 }
 0x33a   : > { %3349 = vmatpush3.bf16.msra.mxu1 %v3751_v53 }
 0x33b   : > { %3350 = vmatprep.subr.bf16.mxu1 %v3752_v52  ;;  %v3791_v52 = vld [vmem:[%s4073_s18 + $0x50] sm:$0xff] }
 0x33e   : > { %3351 = vmatpush3.bf16.msra.mxu1 %v3753_v26 }
 0x33f   : > { %3352 = vmatprep.subr.bf16.mxu1 %v3754_v6 }
 0x342   : > { %3353 = vmatpush3.bf16.msra.mxu1 %v3755_v4 }
 0x343   : > { %3354 = vmatprep.subr.bf16.mxu1 %v3756_v38 }
 0x346   : > { %3355 = vmatpush3.bf16.msra.mxu1 %v3757_v10 }
 0x347   : > { %3356 = vmatprep.subr.bf16.mxu1 %v3758_v37 }
 0x34a   : > { %3357 = vmatpush3.bf16.msra.mxu1 %v3759_v17 }
 0x34b   : > { %3358 = vmatprep.subr.bf16.mxu1 %v3760_v54 }
 0x34e   : > { %3359 = vmatpush3.bf16.msra.mxu1 %v3761_v1 }
 0x351   : > { %2902 = vmatmul.mubr.bf16.vlgmr.msra.gmra.mrb[12].mxu1 %v4695_v62 }
 0x384   : > { %v2774_v31 = vpop.f32.mrb[0].mxu1 }
 0x385   : > { %v2775_v59 = vadd.f32 %v2774_v31, %v2132_v11  ;;  %v2776_v15 = vpop.f32.mrb[1].mxu1 }
 0x386   : > { %v2777_v46 = vadd.f32 %v2776_v15, %v2136_v14  ;;  %v2778_v62 = vpop.f32.mrb[2].mxu1 }
 0x387   : > { %v2910_v25 = vsub.f32 %v3784_v19, %v2775_v59  ;;  %v2779_v41 = vadd.f32 %v2778_v62, %v2132_v11  ;;  %v2780_v20 = vpop.f32.mrb[3].mxu1  ;;  %v2147_v11 = vsub.s32 4, %v3900_v60 }
 0x388   : > { %v2911_v45 = vsub.f32 %v3785_v30, %v2777_v46  ;;  %v2781_v49 = vadd.f32 %v2780_v20, %v2136_v14  ;;  %v2151_v14 = vsub.s32 5, %v3900_v60 }
 0x389   : > { %v2924_v24 = vmul.f32 %v3917_v7, %v2910_v25  ;;  %v2917_v0 = vsub.f32 %v3786_v36, %v2779_v41  ;;  %v2148_v31 = vrot.slane %v4948_v34, %v2147_v11  ;;  %v3792_v41 = vld [vmem:[%s4073_s18 + $0x20] sm:$0xff] }
 0x38a   : > { %v2925_v56 = vmul.f32 %v3917_v7, %v2911_v45  ;;  %v2918_v28 = vsub.f32 %v3787_v40, %v2781_v49  ;;  %v2152_v59 = vrot.slane %v4948_v34, %v2151_v14  ;;  %v3793_v49 = vld [vmem:[%s4073_s18 + $0x28] sm:$0xff] }
 0x38b   : > { %v2938_v61 = vmul.f32 %v2924_v24, %v2924_v24  ;;  %v2931_v27 = vmul.f32 %v3920_v8, %v2917_v0 }
 0x38c   : > { %v2939_v18 = vmul.f32 %v2925_v56, %v2925_v56  ;;  %v2932_v2 = vmul.f32 %v3920_v8, %v2918_v28  ;;  %v3794_v56 = vld [vmem:[%s4073_s18 + $0x58] sm:$0xff] }
 0x38d   : > { %v2945_v3 = vmul.f32 %v2931_v27, %v2931_v27 }
 0x38e   : > { %v2952_v9 = vadd.f32 %v2939_v18, %v2938_v61  ;;  %v2946_v48 = vmul.f32 %v2932_v2, %v2932_v2  ;;  %v3795_v61 = vld [vmem:[%s4073_s18 + $0x60] sm:$0xff] }
 0x390   : > { %v2960_v12 = vadd.f32 %v2946_v48, %v2945_v3 }
 0x3c4   : > { %v2817_v22 = vpop.f32.mrb[4].mxu1 }
 0x3c5   : > { %v2818_v55 = vadd.f32 %v2817_v22, %v2140_v51  ;;  %v2819_v50 = vpop.f32.mrb[5].mxu1  ;;  %v2155_v22 = vsub.s32 6, %v3900_v60 }
 0x3c6   : > { %v2820_v35 = vadd.f32 %v2819_v50, %v2144_v23  ;;  %v2821_v16 = vpop.f32.mrb[6].mxu1 }
 0x3c7   : > { %v2912_v43 = vsub.f32 %v3788_v57, %v2818_v55  ;;  %v2822_v44 = vadd.f32 %v2821_v16, %v2140_v51  ;;  %v2823_v33 = vpop.f32.mrb[7].mxu1  ;;  %v2156_v50 = vrot.slane %v4948_v34, %v2155_v22 }
 0x3c8   : > { %v2913_v47 = vsub.f32 %v3789_v13, %v2820_v35  ;;  %v2824_v39 = vadd.f32 %v2823_v33, %v2144_v23  ;;  %v3796_v13 = vld [vmem:[%s4073_s18 + $0x30] sm:$0xff] }
 0x3c9   : > { %v2926_v21 = vmul.f32 %v3917_v7, %v2912_v43  ;;  %v2919_v32 = vsub.f32 %v3790_v29, %v2822_v44 }
 0x3ca   : > { %v2927_v53 = vmul.f32 %v3917_v7, %v2913_v47  ;;  %v2920_v26 = vsub.f32 %v3791_v52, %v2824_v39 }
 0x3cb   : > { %v2940_v6 = vmul.f32 %v2926_v21, %v2926_v21  ;;  %v2933_v4 = vmul.f32 %v3920_v8, %v2919_v32  ;;  %v3797_v21 = vld [vmem:[%s4073_s18 + $0x68] sm:$0xff]  ;;  %s3080_s18 = sshll.u32 %s5011_s28, 3 }
 0x3cc   : > { %v2941_v38 = vmul.f32 %v2927_v53, %v2927_v53  ;;  %v2934_v10 = vmul.f32 %v3920_v8, %v2920_v26  ;;  %s377_s13 = scalar_lea.vmem %s5007_s8, %s3080_s18 }
 0x3cd   : > { %v2953_v37 = vadd.f32 %v2952_v9, %v2940_v6  ;;  %v2947_v17 = vmul.f32 %v2933_v4, %v2933_v4 }
 0x3ce   : > { %v2948_v54 = vmul.f32 %v2934_v10, %v2934_v10 }
 0x3cf   : > { %v2954_v1 = vadd.f32 %v2953_v37, %v2941_v38  ;;  %v2961_v58 = vadd.f32 %v2960_v12, %v2947_v17 }
 0x3d1   : > { %v2962_v42 = vadd.f32 %v2961_v58, %v2948_v54 }
 0x404   : > { %v2860_v15 = vpop.f32.mrb[8].mxu1 }
 0x405   : > { %v2861_v46 = vadd.f32 %v2860_v15, %v2148_v31  ;;  %v2862_v62 = vpop.f32.mrb[9].mxu1 }
 0x406   : > { %v2863_v19 = vadd.f32 %v2862_v62, %v2152_v59  ;;  %v2864_v25 = vpop.f32.mrb[10].mxu1 }
 0x407   : > { %v2914_v20 = vsub.f32 %v3792_v41, %v2861_v46  ;;  %v2865_v30 = vadd.f32 %v2864_v25, %v2148_v31  ;;  %v2866_v45 = vpop.f32.mrb[11].mxu1 }
 0x408   : > { %v2915_v24 = vsub.f32 %v3793_v49, %v2863_v19  ;;  %v2867_v36 = vadd.f32 %v2866_v45, %v2152_v59 }
 0x409   : > { %v2928_v0 = vmul.f32 %v3917_v7, %v2914_v20  ;;  %v2921_v40 = vsub.f32 %v3794_v56, %v2865_v30 }
 0x40a   : > { %v2929_v28 = vmul.f32 %v3917_v7, %v2915_v24  ;;  %v2922_v27 = vsub.f32 %v3795_v61, %v2867_v36 }
 0x40b   : > { %v2942_v18 = vmul.f32 %v2928_v0, %v2928_v0  ;;  %v2935_v2 = vmul.f32 %v3920_v8, %v2921_v40 }
 0x40c   : > { %v2943_v3 = vmul.f32 %v2929_v28, %v2929_v28  ;;  %v2936_v9 = vmul.f32 %v3920_v8, %v2922_v27 }
 0x40d   : > { %v2949_v48 = vmul.f32 %v2935_v2, %v2935_v2  ;;  %v2955_v12 = vadd.f32 %v2954_v1, %v2942_v18 }
 0x40e   : > { %v2950_v63 = vmul.f32 %v2936_v9, %v2936_v9 }
 0x40f   : > { %v2956_v5 = vadd.f32 %v2955_v12, %v2943_v3  ;;  %v2963_v51 = vadd.f32 %v2962_v42, %v2949_v48 }
 0x411   : > { %v2964_v23 = vadd.f32 %v2963_v51, %v2950_v63 }
 0x424   : > { %v3360_v55 = vpop.f32.mrb[12].mxu1 }
 0x425   : > { %v3361_v35 = vpop.f32.mrb[13].mxu1 }
 0x426   : > { %v3362_v16 = vadd.f32 %v3361_v35, %v3360_v55  ;;  %v3363_v57 = vpop.f32.mrb[14].mxu1 }
 0x427   : > { %v3364_v43 = vpop.f32.mrb[15].mxu1 }
 0x428   : > { %v2904_v44 = vadd.f32 %v3362_v16, %v2156_v50  ;;  %v3365_v33 = vadd.f32 %v3364_v43, %v3363_v57 }
 0x42a   : > { %v2916_v47 = vsub.f32 %v3796_v13, %v2904_v44  ;;  %v2907_v39 = vadd.f32 %v3365_v33, %v2156_v50 }
 0x42c   : > { %v2923_v29 = vsub.f32 %v3797_v21, %v2907_v39  ;;  %v2930_v32 = vmul.f32 %v3917_v7, %v2916_v47 }
 0x42e   : > { %v2944_v53 = vmul.f32 %v2930_v32, %v2930_v32  ;;  %v2937_v60 = vmul.f32 %v3920_v8, %v2923_v29 }
 0x430   : > { %v2957_v52 = vadd.f32 %v2956_v5, %v2944_v53  ;;  %v2951_v34 = vmul.f32 %v2937_v60, %v2937_v60 }
 0x432   : > { %2958 = vadd.xlane.f32.xlu0 %v2957_v52  ;;  %v2965_v26 = vadd.f32 %v2964_v23, %v2951_v34 }
 0x434   : > { %2966 = vadd.xlane.f32.xlu1 %v2965_v26 }
 0x4bf   : > { %v2959_v6 = vpop.xlane.xlu0 %2958 }
 0x4c1   : > { %v2967_v4 = vpop.xlane.xlu1 %2966 }
 0x4c2   : > { %v2968_v38 = vadd.f32 %v2967_v4, %v2959_v6 }
 0x4c4   : > { %v2969_v10 = vrot.slane %v2968_v38, 4 }
 0x4c6   : > { %v2970_v37 = vadd.f32 %v2969_v10, %v2968_v38 }
 0x4c8   : > { %v2971_v17 = vrot.slane %v2970_v37, 2 }
 0x4ca   : > { %v2972_v54 = vadd.f32 %v2971_v17, %v2970_v37 }
 0x4cc   : > { %v2973_v1 = vrot.slane %v2972_v54, 1 }
 0x4ce   : > { %v2974_v7 = vadd.f32 %v2973_v1, %v2972_v54 }
 0x4d0   : > { %v2975_v8 = vmul.f32 3.1887754e-05, %v2974_v7 }
 0x4d2   : > { %2977 = vst [vmem:[%s377_s13] sm:$0xff] %v2975_v8 }
 0x4d3 PF: > { %s18_s27 = sadd.s32 1, %s3804_s27  }
 0x4d4   : > { %p15_p5 = scmp.ge.s32.totalorder %s18_s27, 5  }
 0x4d6   :  { %17 = sbr.rel (!%p15_p5) target bundleno = 1 (0x1), region = 91 }

</bundles_post_ra>
